<compile_context>
chip_gen: v6e
topology: v6e:2x2x1
jax: 0.10.0
libtpu: 0.0.40
codegen_flags: <defaults>
</compile_context>

<pallas_src>
import jax
import jax.numpy as jnp
from jax import lax
from jax.experimental import pallas as pl
from jax.experimental.pallas import tpu as pltpu


def _round_up(x, m):
    return (x + m - 1) // m * m


# ----------------------------------------------------------------------------
# Generation-aware VMEM budgeting.
# ----------------------------------------------------------------------------
def _vmem_capacity_bytes():
    try:
        info = pltpu.get_tpu_info()
        for attr in ("vmem_capacity_bytes", "vmem_size_bytes", "vmem_bytes"):
            v = getattr(info, attr, None)
            if v:
                return int(v)
    except Exception:
        pass
    return 64 * 1024 * 1024  # conservative fallback (v7x per-TensorCore VMEM)


def _vmem_limit_bytes():
    # ~48 MiB on v7x (64 MiB/TC), ~96 MiB on v5e/v6e (128 MiB physical).
    return min(int(_vmem_capacity_bytes() * 3 // 4), 100 * 1024 * 1024)


def _kernel_unroll(nb_block, steps):
    # Decoupled from block size: large blocks keep only a few (NBb, G)
    # temporaries live; small blocks get full unroll for LLO visibility.
    if nb_block <= 128:
        return max(steps - 1, 1)
    if nb_block <= 512:
        return 4
    return 2


def _choose_nb_block(nb, seq_len, d_pad, gate_width, ht_pad):
    """Pick padded NB and an NB block size (multiple of 8) fitting the VMEM budget."""
    nbp0 = _round_up(max(nb, 8), 8)
    budget = int(_vmem_limit_bytes() * 0.85)  # headroom for compiler internals

    def usage(nbb):
        x_blk = 2 * nbb * seq_len * d_pad * 4            # double-buffered raw x blocks (f32)
        w_bufs = 2 * (d_pad + ht_pad) * gate_width * 4   # weight buffers (worst case f32)
        w_bufs += 2 * gate_width * 4                     # bias
        out_blk = 2 * nbb * ht_pad * 4                   # double-buffered output block
        xw_scr = seq_len * nbb * gate_width * 4          # in-kernel projection scratch
        temps = (_kernel_unroll(nbb, seq_len) + 6) * nbb * gate_width * 4
        return x_blk + w_bufs + out_blk + xw_scr + temps

    nbb = nbp0
    # Guarantee >= 2 grid blocks when the batch allows it (v7x megacore sharding).
    if nbp0 >= 16:
        nbb = min(nbb, _round_up((nbp0 + 1) // 2, 8))
    while nbb > 8 and usage(nbb) > budget:
        nbb -= 8
    nbb = max(nbb, 8)
    nbp = _round_up(nbp0, nbb)
    return nbp, nbb


# ----------------------------------------------------------------------------
# Pallas kernel: fused (3-modality, block-diagonal) LSTM with in-kernel
# input projection.
# ----------------------------------------------------------------------------
def _fused_lstm_kernel(x_ref, wih_ref, whh_ref, b_ref, hn_ref, xw_ref):
    # x_ref  : (S, NBb, Dp)   raw concatenated modality inputs, time-major, f32
    # wih_ref: (Dp, G)        fused block-diagonal input->gate weights (compute dtype)
    # whh_ref: (HTp, G)       fused block-diagonal hidden->gate weights (compute dtype)
    # b_ref  : (1, G)         fused gate bias (b_ih + b_hh), f32
    # hn_ref : (NBb, HTp)     output: final hidden state (lane-dense, 128-mult last dim)
    # xw_ref : (S, NBb, G)    VMEM scratch: hoisted projection x @ W_ih + b
    S, NBb, _ = x_ref.shape
    HTp, G = whh_ref.shape
    cdt = whh_ref.dtype

    wih = wih_ref[...]
    whh = whh_ref[...]   # resident across the whole recurrence (constant RHS)
    bias = b_ref[...]
    # TODO(synk): on v5e the recurrence could drive the MXU weight-stationary
    # (pltpu.matmul_push_rhs(whh) once, matmul_acc_lhs per step); left to the
    # compiler here.

    # ---- Hoisted input projection (no serial dependence): MXU matmuls into
    # ---- the VMEM scratch before the recurrence starts. ----
    for t in range(S):
        xt = x_ref[t].astype(cdt)                              # (NBb, Dp)
        xw_ref[t] = jnp.dot(xt, wih,
                            preferred_element_type=jnp.float32) + bias

    def gates(z):
        # Gate slices are 128-lane aligned (HTp is a multiple of 128).
        i_g = jax.nn.sigmoid(z[:, 0 * HTp:1 * HTp])
        f_g = jax.nn.sigmoid(z[:, 1 * HTp:2 * HTp])
        g_g = jnp.tanh(z[:, 2 * HTp:3 * HTp])
        o_g = jax.nn.sigmoid(z[:, 3 * HTp:4 * HTp])
        return i_g, f_g, g_g, o_g

    # ---- Peeled t = 0 step: h0 = c0 = 0 -> no recurrence matmul, no f*c. ----
    z0 = xw_ref[0]
    i0, _unused_f0, g0, o0 = gates(z0)
    c = i0 * g0
    h = o0 * jnp.tanh(c)

    def step(t, carry):
        h, c = carry
        # One fused bf16 MXU matmul per time step: (NBb, HTp) x (HTp, G).
        z = xw_ref[t] + jnp.dot(h.astype(cdt), whh,
                                preferred_element_type=jnp.float32)
        i_g, f_g, g_g, o_g = gates(z)
        c_new = f_g * c + i_g * g_g
        h_new = o_g * jnp.tanh(c_new)
        return (h_new, c_new)

    unroll = _kernel_unroll(NBb, S)
    h, _ = lax.fori_loop(1, S, step, (h, c), unroll=unroll)
    hn_ref[...] = h   # (NBb, HTp) -> lane-dense unmasked stores


# ----------------------------------------------------------------------------
# Parameter construction (PyTorch nn.LSTM default init) and fused packing.
# ----------------------------------------------------------------------------
def pack_fused_params(raw, dims, names):
    Hs = [dims[n][1] for n in names]
    Ds = [dims[n][0] for n in names]
    HT = sum(Hs)
    HTp = _round_up(HT, 128)           # per-gate width: multiple of 128 lanes
    G = 4 * HTp
    Dp = _round_up(sum(Ds), 8)
    h_off = [0, Hs[0], Hs[0] + Hs[1]]
    d_off = [0, Ds[0], Ds[0] + Ds[1]]

    wih = jnp.zeros((Dp, G), jnp.float32)
    whh = jnp.zeros((HTp, G), jnp.float32)
    b = jnp.zeros((G,), jnp.float32)
    for m, name in enumerate(names):
        D, H = dims[name]
        w_ih = raw[name]["w_ih"].reshape(4, H, D)     # gate order [i, f, g, o]
        w_hh = raw[name]["w_hh"].reshape(4, H, H)
        bb = (raw[name]["b_ih"] + raw[name]["b_hh"]).reshape(4, H)
        for q in range(4):
            c0 = q * HTp + h_off[m]
            wih = wih.at[d_off[m]:d_off[m] + D, c0:c0 + H].set(w_ih[q].T)
            whh = whh.at[h_off[m]:h_off[m] + H, c0:c0 + H].set(w_hh[q].T)
            b = b.at[c0:c0 + H].set(bb[q])
    # Padded / foreign-modality columns keep zero weights and zero bias, so the
    # padded hidden columns stay exactly 0 and modalities stay independent.
    return {"w_ih": wih, "w_hh": whh, "b": b.reshape(1, G),
            "h_offsets": h_off, "d_offsets": d_off,
            "hidden_sizes": Hs, "input_sizes": Ds,
            "HT_pad": HTp, "D_pad": Dp}


def init_params(key, config):
    names = ["text", "audio", "pose"]
    dims = {
        "text": (config["lstm_text_input"], config["lstm_text_hidden_size"]),
        "audio": (config["lstm_audio_input"], config["lstm_audio_hidden_size"]),
        "pose": (config["lstm_pose_input"], config["lstm_pose_hidden_size"]),
    }
    keys = jax.random.split(key, 3)
    raw = {}
    for name, k in zip(names, keys):
        D, H = dims[name]
        bound = 1.0 / (H ** 0.5)
        k1, k2, k3, k4 = jax.random.split(k, 4)
        raw[name] = {
            "w_ih": jax.random.uniform(k1, (4 * H, D), jnp.float32, -bound, bound),
            "w_hh": jax.random.uniform(k2, (4 * H, H), jnp.float32, -bound, bound),
            "b_ih": jax.random.uniform(k3, (4 * H,), jnp.float32, -bound, bound),
            "b_hh": jax.random.uniform(k4, (4 * H,), jnp.float32, -bound, bound),
        }
    return {"raw": raw, "packed": pack_fused_params(raw, dims, names),
            "names": names, "dims": dims}


# ----------------------------------------------------------------------------
# UnimodalContextNetwork.forward equivalent.
# ----------------------------------------------------------------------------
def unimodal_context_forward(params, config, x_t, x_a, x_p,
                             compute_dtype=jnp.bfloat16):
    pk = params["packed"]
    Dp, G = pk["w_ih"].shape
    HTp = pk["w_hh"].shape[0]
    batch, context, S, _ = x_t.shape
    NB = batch * context

    def prep(x, use, d):
        x = x.reshape(NB, S, d).astype(jnp.float32)
        # Matches torch: zero the input but still run the LSTM (bias-driven h).
        return x if use else jnp.zeros_like(x)

    xs = [prep(x_t, config["use_text"], config["lstm_text_input"]),
          prep(x_a, config["use_audio"], config["lstm_audio_input"]),
          prep(x_p, config["use_pose"], config["lstm_pose_input"])]
    x_cat = jnp.concatenate(xs, axis=-1)                       # (NB, S, Dsum)
    if Dp > x_cat.shape[-1]:
        x_cat = jnp.pad(x_cat, ((0, 0), (0, 0), (0, Dp - x_cat.shape[-1])))
    x_tm = jnp.transpose(x_cat, (1, 0, 2))                     # (S, NB, Dp)

    NBp, nb_block = _choose_nb_block(NB, S, Dp, G, HTp)
    if NBp > NB:
        x_tm = jnp.pad(x_tm, ((0, 0), (0, NBp - NB), (0, 0)))

    hn = pl.pallas_call(
        _fused_lstm_kernel,
        out_shape=jax.ShapeDtypeStruct((NBp, HTp), jnp.float32),
        grid_spec=pltpu.PrefetchScalarGridSpec(
            num_scalar_prefetch=0,
            grid=(NBp // nb_block,),
            in_specs=[
                pl.BlockSpec((S, nb_block, Dp), lambda n: (0, n, 0)),
                pl.BlockSpec((Dp, G), lambda n: (0, 0)),
                pl.BlockSpec((HTp, G), lambda n: (0, 0)),
                pl.BlockSpec((1, G), lambda n: (0, 0)),
            ],
            out_specs=pl.BlockSpec((nb_block, HTp), lambda n: (n, 0)),
            scratch_shapes=[pltpu.VMEM((S, nb_block, G), jnp.float32)],
        ),
        compiler_params=pltpu.CompilerParams(
            dimension_semantics=("parallel",),
            vmem_limit_bytes=_vmem_limit_bytes(),
        ),
    )(x_tm,
      pk["w_ih"].astype(compute_dtype),
      pk["w_hh"].astype(compute_dtype),
      pk["b"])

    h_off = pk["h_offsets"]
    Hs = pk["hidden_sizes"]
    outs = []
    for m in range(3):
        outs.append(hn[:NB, h_off[m]:h_off[m] + Hs[m]]
                    .reshape(batch, context, Hs[m]))
    return tuple(outs)


# ----------------------------------------------------------------------------
# Pure-JAX reference (PyTorch weight layout, no padding/fusion) for checking.
# ----------------------------------------------------------------------------
def _ref_lstm_final_hidden(x, w_ih, w_hh, b_ih, b_hh):
    NB, S, _ = x.shape
    H = w_hh.shape[1]
    hi = lax.Precision.HIGHEST
    h = jnp.zeros((NB, H), jnp.float32)
    c = jnp.zeros((NB, H), jnp.float32)
    for t in range(S):
        g = (jnp.dot(x[:, t], w_ih.T, precision=hi)
             + jnp.dot(h, w_hh.T, precision=hi) + b_ih + b_hh)
        i_g = jax.nn.sigmoid(g[:, 0 * H:1 * H])
        f_g = jax.nn.sigmoid(g[:, 1 * H:2 * H])
        g_g = jnp.tanh(g[:, 2 * H:3 * H])
        o_g = jax.nn.sigmoid(g[:, 3 * H:4 * H])
        c = f_g * c + i_g * g_g
        h = o_g * jnp.tanh(c)
    return h


if __name__ == "__main__":
    config = {
        "device": "tpu",
        "lstm_text_input": 12,
        "lstm_text_hidden_size": 16,
        "lstm_audio_input": 20,
        "lstm_audio_hidden_size": 24,
        "lstm_pose_input": 8,
        "lstm_pose_hidden_size": 16,
        "use_text": True,
        "use_audio": True,
        "use_pose": True,
    }

    key = jax.random.PRNGKey(0)
    kparams, kx1, kx2, kx3 = jax.random.split(key, 4)
    params = init_params(kparams, config)

    batch, context, seq = 2, 3, 8
    x_t = jax.random.normal(kx1, (batch, context, seq, config["lstm_text_input"]), jnp.float32)
    x_a = jax.random.normal(kx2, (batch, context, seq, config["lstm_audio_input"]), jnp.float32)
    x_p = jax.random.normal(kx3, (batch, context, seq, config["lstm_pose_input"]), jnp.float32)

    # Performance mode: bf16 MXU operands, f32 accumulation + f32 gate math.
    t_bf, a_bf, p_bf = unimodal_context_forward(
        params, config, x_t, x_a, x_p, compute_dtype=jnp.bfloat16)
    jax.block_until_ready((t_bf, a_bf, p_bf))

    # Exact mode (f32 operands, multi-pass MXU) for tight numerical verification.
    t_f32, a_f32, p_f32 = unimodal_context_forward(
        params, config, x_t, x_a, x_p, compute_dtype=jnp.float32)
    jax.block_until_ready((t_f32, a_f32, p_f32))

    # Pure-JAX reference using the original (unfused) PyTorch-layout weights.
    def ref_run(x, name, d):
        nb = batch * context
        raw = params["raw"][name]
        hn = _ref_lstm_final_hidden(x.reshape(nb, seq, d).astype(jnp.float32),
                                    raw["w_ih"], raw["w_hh"],
                                    raw["b_ih"], raw["b_hh"])
        return hn.reshape(batch, context, -1)

    ref_t = ref_run(x_t, "text", config["lstm_text_input"])
    ref_a = ref_run(x_a, "audio", config["lstm_audio_input"])
    ref_p = ref_run(x_p, "pose", config["lstm_pose_input"])

    assert t_bf.shape == (batch, context, config["lstm_text_hidden_size"])
    assert a_bf.shape == (batch, context, config["lstm_audio_hidden_size"])
    assert p_bf.shape == (batch, context, config["lstm_pose_hidden_size"])

    # Exact mode: tight check of the fused block-diagonal recurrence logic.
    assert jnp.allclose(t_f32, ref_t, atol=1e-3, rtol=1e-3)
    assert jnp.allclose(a_f32, ref_a, atol=1e-3, rtol=1e-3)
    assert jnp.allclose(p_f32, ref_p, atol=1e-3, rtol=1e-3)
    # bf16 mode: mixed-precision sanity check (looser tolerance).
    assert jnp.allclose(t_bf, ref_t, atol=5e-2, rtol=5e-2)
    assert jnp.allclose(a_bf, ref_a, atol=5e-2, rtol=5e-2)
    assert jnp.allclose(p_bf, ref_p, atol=5e-2, rtol=5e-2)

    print("KERNEL_OK")
</pallas_src>

<mosaic_0001>
module attributes {stable_mosaic.version = 11 : i64} {
  func.func @_fused_lstm_kernel(%arg0: i32, %arg1: memref<8x8x40xf32, #tpu.memory_space<vmem>>, %arg2: memref<40x512xbf16, #tpu.memory_space<vmem>>, %arg3: memref<128x512xbf16, #tpu.memory_space<vmem>>, %arg4: memref<1x512xf32, #tpu.memory_space<vmem>>, %arg5: memref<8x128xf32, #tpu.memory_space<vmem>>, %arg6: memref<8x8x512xf32, #tpu.memory_space<vmem>>) attributes {dimension_semantics = [#tpu.dimension_semantics<parallel>], iteration_bounds = array<i64: 1>, scalar_prefetch = 0 : i64, scratch_operands = 1 : i64, tpu.core_type = #tpu.core_type<tc>, window_params = [{transform_indices = @transform_0, window_bounds = array<i64: 8, 8, 40>}, {pipeline_mode = #tpu.pipeline_mode<synchronous>, transform_indices = @transform_1, window_bounds = array<i64: 40, 512>}, {pipeline_mode = #tpu.pipeline_mode<synchronous>, transform_indices = @transform_2, window_bounds = array<i64: 128, 512>}, {pipeline_mode = #tpu.pipeline_mode<synchronous>, transform_indices = @transform_3, window_bounds = array<i64: 1, 512>}, {transform_indices = @transform_4, window_bounds = array<i64: 8, 128>}]} {
    %c0 = arith.constant 0 : index
    %c0_0 = arith.constant 0 : index
    %0 = vector.load %arg2[%c0, %c0_0] : memref<40x512xbf16, #tpu.memory_space<vmem>>, vector<40x512xbf16>
    %c0_1 = arith.constant 0 : index
    %c0_2 = arith.constant 0 : index
    %1 = vector.load %arg3[%c0_1, %c0_2] : memref<128x512xbf16, #tpu.memory_space<vmem>>, vector<128x512xbf16>
    %c0_3 = arith.constant 0 : index
    %c0_4 = arith.constant 0 : index
    %2 = vector.load %arg4[%c0_3, %c0_4] : memref<1x512xf32, #tpu.memory_space<vmem>>, vector<1x512xf32>
    %c0_5 = arith.constant 0 : index
    %c0_6 = arith.constant 0 : index
    %c0_7 = arith.constant 0 : index
    %3 = vector.load %arg1[%c0_5, %c0_6, %c0_7] : memref<8x8x40xf32, #tpu.memory_space<vmem>>, vector<1x8x40xf32>
    %4 = vector.shape_cast %3 : vector<1x8x40xf32> to vector<8x40xf32>
    %5 = arith.truncf %4 : vector<8x40xf32> to vector<8x40xbf16>
    %cst = arith.constant dense<0.000000e+00> : vector<8x512xf32>
    %6 = tpu.matmul %5, %0, %cst {dimension_numbers = #tpu.dot_dimension_numbers<[1], [0], [0], [1], [0, 0, 1, 1], [], []>} : vector<8x40xbf16>, vector<40x512xbf16>, vector<8x512xf32> -> vector<8x512xf32>
    %7 = vector.broadcast %2 : vector<1x512xf32> to vector<8x512xf32>
    %8 = arith.addf %6, %7 : vector<8x512xf32>
    %c0_8 = arith.constant 0 : index
    %c0_9 = arith.constant 0 : index
    %c0_10 = arith.constant 0 : index
    %9 = vector.load %arg6[%c0_8, %c0_9, %c0_10] : memref<8x8x512xf32, #tpu.memory_space<vmem>>, vector<1x8x512xf32>
    %10 = vector.shape_cast %9 : vector<1x8x512xf32> to vector<8x512xf32>
    %11 = vector.shape_cast %8 : vector<8x512xf32> to vector<1x8x512xf32>
    tpu.vector_store %arg6[%c0_8, %c0_9, %c0_10], %11 {strides = array<i32>} : memref<8x8x512xf32, #tpu.memory_space<vmem>>, vector<1x8x512xf32>,
    %c1 = arith.constant 1 : index
    %c0_11 = arith.constant 0 : index
    %c0_12 = arith.constant 0 : index
    %12 = vector.load %arg1[%c1, %c0_11, %c0_12] : memref<8x8x40xf32, #tpu.memory_space<vmem>>, vector<1x8x40xf32>
    %13 = vector.shape_cast %12 : vector<1x8x40xf32> to vector<8x40xf32>
    %14 = arith.truncf %13 : vector<8x40xf32> to vector<8x40xbf16>
    %cst_13 = arith.constant dense<0.000000e+00> : vector<8x512xf32>
    %15 = tpu.matmul %14, %0, %cst_13 {dimension_numbers = #tpu.dot_dimension_numbers<[1], [0], [0], [1], [0, 0, 1, 1], [], []>} : vector<8x40xbf16>, vector<40x512xbf16>, vector<8x512xf32> -> vector<8x512xf32>
    %16 = vector.broadcast %2 : vector<1x512xf32> to vector<8x512xf32>
    %17 = arith.addf %15, %16 : vector<8x512xf32>
    %c1_14 = arith.constant 1 : index
    %c0_15 = arith.constant 0 : index
    %c0_16 = arith.constant 0 : index
    %18 = vector.load %arg6[%c1_14, %c0_15, %c0_16] : memref<8x8x512xf32, #tpu.memory_space<vmem>>, vector<1x8x512xf32>
    %19 = vector.shape_cast %18 : vector<1x8x512xf32> to vector<8x512xf32>
    %20 = vector.shape_cast %17 : vector<8x512xf32> to vector<1x8x512xf32>
    tpu.vector_store %arg6[%c1_14, %c0_15, %c0_16], %20 {strides = array<i32>} : memref<8x8x512xf32, #tpu.memory_space<vmem>>, vector<1x8x512xf32>,
    %c2 = arith.constant 2 : index
    %c0_17 = arith.constant 0 : index
    %c0_18 = arith.constant 0 : index
    %21 = vector.load %arg1[%c2, %c0_17, %c0_18] : memref<8x8x40xf32, #tpu.memory_space<vmem>>, vector<1x8x40xf32>
    %22 = vector.shape_cast %21 : vector<1x8x40xf32> to vector<8x40xf32>
    %23 = arith.truncf %22 : vector<8x40xf32> to vector<8x40xbf16>
    %cst_19 = arith.constant dense<0.000000e+00> : vector<8x512xf32>
    %24 = tpu.matmul %23, %0, %cst_19 {dimension_numbers = #tpu.dot_dimension_numbers<[1], [0], [0], [1], [0, 0, 1, 1], [], []>} : vector<8x40xbf16>, vector<40x512xbf16>, vector<8x512xf32> -> vector<8x512xf32>
    %25 = vector.broadcast %2 : vector<1x512xf32> to vector<8x512xf32>
    %26 = arith.addf %24, %25 : vector<8x512xf32>
    %c2_20 = arith.constant 2 : index
    %c0_21 = arith.constant 0 : index
    %c0_22 = arith.constant 0 : index
    %27 = vector.load %arg6[%c2_20, %c0_21, %c0_22] : memref<8x8x512xf32, #tpu.memory_space<vmem>>, vector<1x8x512xf32>
    %28 = vector.shape_cast %27 : vector<1x8x512xf32> to vector<8x512xf32>
    %29 = vector.shape_cast %26 : vector<8x512xf32> to vector<1x8x512xf32>
    tpu.vector_store %arg6[%c2_20, %c0_21, %c0_22], %29 {strides = array<i32>} : memref<8x8x512xf32, #tpu.memory_space<vmem>>, vector<1x8x512xf32>,
    %c3 = arith.constant 3 : index
    %c0_23 = arith.constant 0 : index
    %c0_24 = arith.constant 0 : index
    %30 = vector.load %arg1[%c3, %c0_23, %c0_24] : memref<8x8x40xf32, #tpu.memory_space<vmem>>, vector<1x8x40xf32>
    %31 = vector.shape_cast %30 : vector<1x8x40xf32> to vector<8x40xf32>
    %32 = arith.truncf %31 : vector<8x40xf32> to vector<8x40xbf16>
    %cst_25 = arith.constant dense<0.000000e+00> : vector<8x512xf32>
    %33 = tpu.matmul %32, %0, %cst_25 {dimension_numbers = #tpu.dot_dimension_numbers<[1], [0], [0], [1], [0, 0, 1, 1], [], []>} : vector<8x40xbf16>, vector<40x512xbf16>, vector<8x512xf32> -> vector<8x512xf32>
    %34 = vector.broadcast %2 : vector<1x512xf32> to vector<8x512xf32>
    %35 = arith.addf %33, %34 : vector<8x512xf32>
    %c3_26 = arith.constant 3 : index
    %c0_27 = arith.constant 0 : index
    %c0_28 = arith.constant 0 : index
    %36 = vector.load %arg6[%c3_26, %c0_27, %c0_28] : memref<8x8x512xf32, #tpu.memory_space<vmem>>, vector<1x8x512xf32>
    %37 = vector.shape_cast %36 : vector<1x8x512xf32> to vector<8x512xf32>
    %38 = vector.shape_cast %35 : vector<8x512xf32> to vector<1x8x512xf32>
    tpu.vector_store %arg6[%c3_26, %c0_27, %c0_28], %38 {strides = array<i32>} : memref<8x8x512xf32, #tpu.memory_space<vmem>>, vector<1x8x512xf32>,
    %c4 = arith.constant 4 : index
    %c0_29 = arith.constant 0 : index
    %c0_30 = arith.constant 0 : index
    %39 = vector.load %arg1[%c4, %c0_29, %c0_30] : memref<8x8x40xf32, #tpu.memory_space<vmem>>, vector<1x8x40xf32>
    %40 = vector.shape_cast %39 : vector<1x8x40xf32> to vector<8x40xf32>
    %41 = arith.truncf %40 : vector<8x40xf32> to vector<8x40xbf16>
    %cst_31 = arith.constant dense<0.000000e+00> : vector<8x512xf32>
    %42 = tpu.matmul %41, %0, %cst_31 {dimension_numbers = #tpu.dot_dimension_numbers<[1], [0], [0], [1], [0, 0, 1, 1], [], []>} : vector<8x40xbf16>, vector<40x512xbf16>, vector<8x512xf32> -> vector<8x512xf32>
    %43 = vector.broadcast %2 : vector<1x512xf32> to vector<8x512xf32>
    %44 = arith.addf %42, %43 : vector<8x512xf32>
    %c4_32 = arith.constant 4 : index
    %c0_33 = arith.constant 0 : index
    %c0_34 = arith.constant 0 : index
    %45 = vector.load %arg6[%c4_32, %c0_33, %c0_34] : memref<8x8x512xf32, #tpu.memory_space<vmem>>, vector<1x8x512xf32>
    %46 = vector.shape_cast %45 : vector<1x8x512xf32> to vector<8x512xf32>
    %47 = vector.shape_cast %44 : vector<8x512xf32> to vector<1x8x512xf32>
    tpu.vector_store %arg6[%c4_32, %c0_33, %c0_34], %47 {strides = array<i32>} : memref<8x8x512xf32, #tpu.memory_space<vmem>>, vector<1x8x512xf32>,
    %c5 = arith.constant 5 : index
    %c0_35 = arith.constant 0 : index
    %c0_36 = arith.constant 0 : index
    %48 = vector.load %arg1[%c5, %c0_35, %c0_36] : memref<8x8x40xf32, #tpu.memory_space<vmem>>, vector<1x8x40xf32>
    %49 = vector.shape_cast %48 : vector<1x8x40xf32> to vector<8x40xf32>
    %50 = arith.truncf %49 : vector<8x40xf32> to vector<8x40xbf16>
    %cst_37 = arith.constant dense<0.000000e+00> : vector<8x512xf32>
    %51 = tpu.matmul %50, %0, %cst_37 {dimension_numbers = #tpu.dot_dimension_numbers<[1], [0], [0], [1], [0, 0, 1, 1], [], []>} : vector<8x40xbf16>, vector<40x512xbf16>, vector<8x512xf32> -> vector<8x512xf32>
    %52 = vector.broadcast %2 : vector<1x512xf32> to vector<8x512xf32>
    %53 = arith.addf %51, %52 : vector<8x512xf32>
    %c5_38 = arith.constant 5 : index
    %c0_39 = arith.constant 0 : index
    %c0_40 = arith.constant 0 : index
    %54 = vector.load %arg6[%c5_38, %c0_39, %c0_40] : memref<8x8x512xf32, #tpu.memory_space<vmem>>, vector<1x8x512xf32>
    %55 = vector.shape_cast %54 : vector<1x8x512xf32> to vector<8x512xf32>
    %56 = vector.shape_cast %53 : vector<8x512xf32> to vector<1x8x512xf32>
    tpu.vector_store %arg6[%c5_38, %c0_39, %c0_40], %56 {strides = array<i32>} : memref<8x8x512xf32, #tpu.memory_space<vmem>>, vector<1x8x512xf32>,
    %c6 = arith.constant 6 : index
    %c0_41 = arith.constant 0 : index
    %c0_42 = arith.constant 0 : index
    %57 = vector.load %arg1[%c6, %c0_41, %c0_42] : memref<8x8x40xf32, #tpu.memory_space<vmem>>, vector<1x8x40xf32>
    %58 = vector.shape_cast %57 : vector<1x8x40xf32> to vector<8x40xf32>
    %59 = arith.truncf %58 : vector<8x40xf32> to vector<8x40xbf16>
    %cst_43 = arith.constant dense<0.000000e+00> : vector<8x512xf32>
    %60 = tpu.matmul %59, %0, %cst_43 {dimension_numbers = #tpu.dot_dimension_numbers<[1], [0], [0], [1], [0, 0, 1, 1], [], []>} : vector<8x40xbf16>, vector<40x512xbf16>, vector<8x512xf32> -> vector<8x512xf32>
    %61 = vector.broadcast %2 : vector<1x512xf32> to vector<8x512xf32>
    %62 = arith.addf %60, %61 : vector<8x512xf32>
    %c6_44 = arith.constant 6 : index
    %c0_45 = arith.constant 0 : index
    %c0_46 = arith.constant 0 : index
    %63 = vector.load %arg6[%c6_44, %c0_45, %c0_46] : memref<8x8x512xf32, #tpu.memory_space<vmem>>, vector<1x8x512xf32>
    %64 = vector.shape_cast %63 : vector<1x8x512xf32> to vector<8x512xf32>
    %65 = vector.shape_cast %62 : vector<8x512xf32> to vector<1x8x512xf32>
    tpu.vector_store %arg6[%c6_44, %c0_45, %c0_46], %65 {strides = array<i32>} : memref<8x8x512xf32, #tpu.memory_space<vmem>>, vector<1x8x512xf32>,
    %c7 = arith.constant 7 : index
    %c0_47 = arith.constant 0 : index
    %c0_48 = arith.constant 0 : index
    %66 = vector.load %arg1[%c7, %c0_47, %c0_48] : memref<8x8x40xf32, #tpu.memory_space<vmem>>, vector<1x8x40xf32>
    %67 = vector.shape_cast %66 : vector<1x8x40xf32> to vector<8x40xf32>
    %68 = arith.truncf %67 : vector<8x40xf32> to vector<8x40xbf16>
    %cst_49 = arith.constant dense<0.000000e+00> : vector<8x512xf32>
    %69 = tpu.matmul %68, %0, %cst_49 {dimension_numbers = #tpu.dot_dimension_numbers<[1], [0], [0], [1], [0, 0, 1, 1], [], []>} : vector<8x40xbf16>, vector<40x512xbf16>, vector<8x512xf32> -> vector<8x512xf32>
    %70 = vector.broadcast %2 : vector<1x512xf32> to vector<8x512xf32>
    %71 = arith.addf %69, %70 : vector<8x512xf32>
    %c7_50 = arith.constant 7 : index
    %c0_51 = arith.constant 0 : index
    %c0_52 = arith.constant 0 : index
    %72 = vector.load %arg6[%c7_50, %c0_51, %c0_52] : memref<8x8x512xf32, #tpu.memory_space<vmem>>, vector<1x8x512xf32>
    %73 = vector.shape_cast %72 : vector<1x8x512xf32> to vector<8x512xf32>
    %74 = vector.shape_cast %71 : vector<8x512xf32> to vector<1x8x512xf32>
    tpu.vector_store %arg6[%c7_50, %c0_51, %c0_52], %74 {strides = array<i32>} : memref<8x8x512xf32, #tpu.memory_space<vmem>>, vector<1x8x512xf32>,
    %c0_53 = arith.constant 0 : index
    %c0_54 = arith.constant 0 : index
    %c0_55 = arith.constant 0 : index
    %75 = vector.load %arg6[%c0_53, %c0_54, %c0_55] : memref<8x8x512xf32, #tpu.memory_space<vmem>>, vector<1x8x512xf32>
    %76 = vector.shape_cast %75 : vector<1x8x512xf32> to vector<8x512xf32>
    %77 = vector.extract_strided_slice %76 {offsets = [0, 0], sizes = [8, 128], strides = [1, 1]} : vector<8x512xf32> to vector<8x128xf32>
    %78 = arith.negf %77 : vector<8x128xf32>
    %79 = math.exp %78 : vector<8x128xf32>
    %cst_56 = arith.constant 1.000000e+00 : f32
    %80 = vector.broadcast %cst_56 : f32 to vector<8x128xf32>
    %81 = arith.addf %80, %79 : vector<8x128xf32>
    %82 = arith.divf %80, %81 : vector<8x128xf32>
    %83 = vector.extract_strided_slice %76 {offsets = [0, 256], sizes = [8, 128], strides = [1, 1]} : vector<8x512xf32> to vector<8x128xf32>
    %84 = math.tanh %83 : vector<8x128xf32>
    %85 = vector.extract_strided_slice %76 {offsets = [0, 384], sizes = [8, 128], strides = [1, 1]} : vector<8x512xf32> to vector<8x128xf32>
    %86 = arith.negf %85 : vector<8x128xf32>
    %87 = math.exp %86 : vector<8x128xf32>
    %cst_57 = arith.constant 1.000000e+00 : f32
    %88 = vector.broadcast %cst_57 : f32 to vector<8x128xf32>
    %89 = arith.addf %88, %87 : vector<8x128xf32>
    %90 = arith.divf %88, %89 : vector<8x128xf32>
    %91 = arith.mulf %82, %84 : vector<8x128xf32>
    %92 = math.tanh %91 : vector<8x128xf32>
    %93 = arith.mulf %90, %92 : vector<8x128xf32>
    %c1_i32 = arith.constant 1 : i32
    %94 = arith.index_cast %c1_i32 : i32 to index
    %c0_58 = arith.constant 0 : index
    %c0_59 = arith.constant 0 : index
    %95 = vector.load %arg6[%94, %c0_58, %c0_59] : memref<8x8x512xf32, #tpu.memory_space<vmem>>, vector<1x8x512xf32>
    %96 = vector.shape_cast %95 : vector<1x8x512xf32> to vector<8x512xf32>
    %97 = arith.truncf %93 : vector<8x128xf32> to vector<8x128xbf16>
    %cst_60 = arith.constant dense<0.000000e+00> : vector<8x512xf32>
    %98 = tpu.matmul %97, %1, %cst_60 {dimension_numbers = #tpu.dot_dimension_numbers<[1], [0], [0], [1], [0, 0, 1, 1], [], []>} : vector<8x128xbf16>, vector<128x512xbf16>, vector<8x512xf32> -> vector<8x512xf32>
    %99 = arith.addf %96, %98 : vector<8x512xf32>
    %100 = vector.extract_strided_slice %99 {offsets = [0, 0], sizes = [8, 128], strides = [1, 1]} : vector<8x512xf32> to vector<8x128xf32>
    %101 = arith.negf %100 : vector<8x128xf32>
    %102 = math.exp %101 : vector<8x128xf32>
    %cst_61 = arith.constant 1.000000e+00 : f32
    %103 = vector.broadcast %cst_61 : f32 to vector<8x128xf32>
    %104 = arith.addf %103, %102 : vector<8x128xf32>
    %105 = arith.divf %103, %104 : vector<8x128xf32>
    %106 = vector.extract_strided_slice %99 {offsets = [0, 128], sizes = [8, 128], strides = [1, 1]} : vector<8x512xf32> to vector<8x128xf32>
    %107 = arith.negf %106 : vector<8x128xf32>
    %108 = math.exp %107 : vector<8x128xf32>
    %cst_62 = arith.constant 1.000000e+00 : f32
    %109 = vector.broadcast %cst_62 : f32 to vector<8x128xf32>
    %110 = arith.addf %109, %108 : vector<8x128xf32>
    %111 = arith.divf %109, %110 : vector<8x128xf32>
    %112 = vector.extract_strided_slice %99 {offsets = [0, 256], sizes = [8, 128], strides = [1, 1]} : vector<8x512xf32> to vector<8x128xf32>
    %113 = math.tanh %112 : vector<8x128xf32>
    %114 = vector.extract_strided_slice %99 {offsets = [0, 384], sizes = [8, 128], strides = [1, 1]} : vector<8x512xf32> to vector<8x128xf32>
    %115 = arith.negf %114 : vector<8x128xf32>
    %116 = math.exp %115 : vector<8x128xf32>
    %cst_63 = arith.constant 1.000000e+00 : f32
    %117 = vector.broadcast %cst_63 : f32 to vector<8x128xf32>
    %118 = arith.addf %117, %116 : vector<8x128xf32>
    %119 = arith.divf %117, %118 : vector<8x128xf32>
    %120 = arith.mulf %111, %91 : vector<8x128xf32>
    %121 = arith.mulf %105, %113 : vector<8x128xf32>
    %122 = arith.addf %120, %121 : vector<8x128xf32>
    %123 = math.tanh %122 : vector<8x128xf32>
    %124 = arith.mulf %119, %123 : vector<8x128xf32>
    %c2_i32 = arith.constant 2 : i32
    %125 = arith.index_cast %c2_i32 : i32 to index
    %c0_64 = arith.constant 0 : index
    %c0_65 = arith.constant 0 : index
    %126 = vector.load %arg6[%125, %c0_64, %c0_65] : memref<8x8x512xf32, #tpu.memory_space<vmem>>, vector<1x8x512xf32>
    %127 = vector.shape_cast %126 : vector<1x8x512xf32> to vector<8x512xf32>
    %128 = arith.truncf %124 : vector<8x128xf32> to vector<8x128xbf16>
    %cst_66 = arith.constant dense<0.000000e+00> : vector<8x512xf32>
    %129 = tpu.matmul %128, %1, %cst_66 {dimension_numbers = #tpu.dot_dimension_numbers<[1], [0], [0], [1], [0, 0, 1, 1], [], []>} : vector<8x128xbf16>, vector<128x512xbf16>, vector<8x512xf32> -> vector<8x512xf32>
    %130 = arith.addf %127, %129 : vector<8x512xf32>
    %131 = vector.extract_strided_slice %130 {offsets = [0, 0], sizes = [8, 128], strides = [1, 1]} : vector<8x512xf32> to vector<8x128xf32>
    %132 = arith.negf %131 : vector<8x128xf32>
    %133 = math.exp %132 : vector<8x128xf32>
    %cst_67 = arith.constant 1.000000e+00 : f32
    %134 = vector.broadcast %cst_67 : f32 to vector<8x128xf32>
    %135 = arith.addf %134, %133 : vector<8x128xf32>
    %136 = arith.divf %134, %135 : vector<8x128xf32>
    %137 = vector.extract_strided_slice %130 {offsets = [0, 128], sizes = [8, 128], strides = [1, 1]} : vector<8x512xf32> to vector<8x128xf32>
    %138 = arith.negf %137 : vector<8x128xf32>
    %139 = math.exp %138 : vector<8x128xf32>
    %cst_68 = arith.constant 1.000000e+00 : f32
    %140 = vector.broadcast %cst_68 : f32 to vector<8x128xf32>
    %141 = arith.addf %140, %139 : vector<8x128xf32>
    %142 = arith.divf %140, %141 : vector<8x128xf32>
    %143 = vector.extract_strided_slice %130 {offsets = [0, 256], sizes = [8, 128], strides = [1, 1]} : vector<8x512xf32> to vector<8x128xf32>
    %144 = math.tanh %143 : vector<8x128xf32>
    %145 = vector.extract_strided_slice %130 {offsets = [0, 384], sizes = [8, 128], strides = [1, 1]} : vector<8x512xf32> to vector<8x128xf32>
    %146 = arith.negf %145 : vector<8x128xf32>
    %147 = math.exp %146 : vector<8x128xf32>
    %cst_69 = arith.constant 1.000000e+00 : f32
    %148 = vector.broadcast %cst_69 : f32 to vector<8x128xf32>
    %149 = arith.addf %148, %147 : vector<8x128xf32>
    %150 = arith.divf %148, %149 : vector<8x128xf32>
    %151 = arith.mulf %142, %122 : vector<8x128xf32>
    %152 = arith.mulf %136, %144 : vector<8x128xf32>
    %153 = arith.addf %151, %152 : vector<8x128xf32>
    %154 = math.tanh %153 : vector<8x128xf32>
    %155 = arith.mulf %150, %154 : vector<8x128xf32>
    %c3_i32 = arith.constant 3 : i32
    %156 = arith.index_cast %c3_i32 : i32 to index
    %c0_70 = arith.constant 0 : index
    %c0_71 = arith.constant 0 : index
    %157 = vector.load %arg6[%156, %c0_70, %c0_71] : memref<8x8x512xf32, #tpu.memory_space<vmem>>, vector<1x8x512xf32>
    %158 = vector.shape_cast %157 : vector<1x8x512xf32> to vector<8x512xf32>
    %159 = arith.truncf %155 : vector<8x128xf32> to vector<8x128xbf16>
    %cst_72 = arith.constant dense<0.000000e+00> : vector<8x512xf32>
    %160 = tpu.matmul %159, %1, %cst_72 {dimension_numbers = #tpu.dot_dimension_numbers<[1], [0], [0], [1], [0, 0, 1, 1], [], []>} : vector<8x128xbf16>, vector<128x512xbf16>, vector<8x512xf32> -> vector<8x512xf32>
    %161 = arith.addf %158, %160 : vector<8x512xf32>
    %162 = vector.extract_strided_slice %161 {offsets = [0, 0], sizes = [8, 128], strides = [1, 1]} : vector<8x512xf32> to vector<8x128xf32>
    %163 = arith.negf %162 : vector<8x128xf32>
    %164 = math.exp %163 : vector<8x128xf32>
    %cst_73 = arith.constant 1.000000e+00 : f32
    %165 = vector.broadcast %cst_73 : f32 to vector<8x128xf32>
    %166 = arith.addf %165, %164 : vector<8x128xf32>
    %167 = arith.divf %165, %166 : vector<8x128xf32>
    %168 = vector.extract_strided_slice %161 {offsets = [0, 128], sizes = [8, 128], strides = [1, 1]} : vector<8x512xf32> to vector<8x128xf32>
    %169 = arith.negf %168 : vector<8x128xf32>
    %170 = math.exp %169 : vector<8x128xf32>
    %cst_74 = arith.constant 1.000000e+00 : f32
    %171 = vector.broadcast %cst_74 : f32 to vector<8x128xf32>
    %172 = arith.addf %171, %170 : vector<8x128xf32>
    %173 = arith.divf %171, %172 : vector<8x128xf32>
    %174 = vector.extract_strided_slice %161 {offsets = [0, 256], sizes = [8, 128], strides = [1, 1]} : vector<8x512xf32> to vector<8x128xf32>
    %175 = math.tanh %174 : vector<8x128xf32>
    %176 = vector.extract_strided_slice %161 {offsets = [0, 384], sizes = [8, 128], strides = [1, 1]} : vector<8x512xf32> to vector<8x128xf32>
    %177 = arith.negf %176 : vector<8x128xf32>
    %178 = math.exp %177 : vector<8x128xf32>
    %cst_75 = arith.constant 1.000000e+00 : f32
    %179 = vector.broadcast %cst_75 : f32 to vector<8x128xf32>
    %180 = arith.addf %179, %178 : vector<8x128xf32>
    %181 = arith.divf %179, %180 : vector<8x128xf32>
    %182 = arith.mulf %173, %153 : vector<8x128xf32>
    %183 = arith.mulf %167, %175 : vector<8x128xf32>
    %184 = arith.addf %182, %183 : vector<8x128xf32>
    %185 = math.tanh %184 : vector<8x128xf32>
    %186 = arith.mulf %181, %185 : vector<8x128xf32>
    %c4_i32 = arith.constant 4 : i32
    %187 = arith.index_cast %c4_i32 : i32 to index
    %c0_76 = arith.constant 0 : index
    %c0_77 = arith.constant 0 : index
    %188 = vector.load %arg6[%187, %c0_76, %c0_77] : memref<8x8x512xf32, #tpu.memory_space<vmem>>, vector<1x8x512xf32>
    %189 = vector.shape_cast %188 : vector<1x8x512xf32> to vector<8x512xf32>
    %190 = arith.truncf %186 : vector<8x128xf32> to vector<8x128xbf16>
    %cst_78 = arith.constant dense<0.000000e+00> : vector<8x512xf32>
    %191 = tpu.matmul %190, %1, %cst_78 {dimension_numbers = #tpu.dot_dimension_numbers<[1], [0], [0], [1], [0, 0, 1, 1], [], []>} : vector<8x128xbf16>, vector<128x512xbf16>, vector<8x512xf32> -> vector<8x512xf32>
    %192 = arith.addf %189, %191 : vector<8x512xf32>
    %193 = vector.extract_strided_slice %192 {offsets = [0, 0], sizes = [8, 128], strides = [1, 1]} : vector<8x512xf32> to vector<8x128xf32>
    %194 = arith.negf %193 : vector<8x128xf32>
    %195 = math.exp %194 : vector<8x128xf32>
    %cst_79 = arith.constant 1.000000e+00 : f32
    %196 = vector.broadcast %cst_79 : f32 to vector<8x128xf32>
    %197 = arith.addf %196, %195 : vector<8x128xf32>
    %198 = arith.divf %196, %197 : vector<8x128xf32>
    %199 = vector.extract_strided_slice %192 {offsets = [0, 128], sizes = [8, 128], strides = [1, 1]} : vector<8x512xf32> to vector<8x128xf32>
    %200 = arith.negf %199 : vector<8x128xf32>
    %201 = math.exp %200 : vector<8x128xf32>
    %cst_80 = arith.constant 1.000000e+00 : f32
    %202 = vector.broadcast %cst_80 : f32 to vector<8x128xf32>
    %203 = arith.addf %202, %201 : vector<8x128xf32>
    %204 = arith.divf %202, %203 : vector<8x128xf32>
    %205 = vector.extract_strided_slice %192 {offsets = [0, 256], sizes = [8, 128], strides = [1, 1]} : vector<8x512xf32> to vector<8x128xf32>
    %206 = math.tanh %205 : vector<8x128xf32>
    %207 = vector.extract_strided_slice %192 {offsets = [0, 384], sizes = [8, 128], strides = [1, 1]} : vector<8x512xf32> to vector<8x128xf32>
    %208 = arith.negf %207 : vector<8x128xf32>
    %209 = math.exp %208 : vector<8x128xf32>
    %cst_81 = arith.constant 1.000000e+00 : f32
    %210 = vector.broadcast %cst_81 : f32 to vector<8x128xf32>
    %211 = arith.addf %210, %209 : vector<8x128xf32>
    %212 = arith.divf %210, %211 : vector<8x128xf32>
    %213 = arith.mulf %204, %184 : vector<8x128xf32>
    %214 = arith.mulf %198, %206 : vector<8x128xf32>
    %215 = arith.addf %213, %214 : vector<8x128xf32>
    %216 = math.tanh %215 : vector<8x128xf32>
    %217 = arith.mulf %212, %216 : vector<8x128xf32>
    %c5_i32 = arith.constant 5 : i32
    %218 = arith.index_cast %c5_i32 : i32 to index
    %c0_82 = arith.constant 0 : index
    %c0_83 = arith.constant 0 : index
    %219 = vector.load %arg6[%218, %c0_82, %c0_83] : memref<8x8x512xf32, #tpu.memory_space<vmem>>, vector<1x8x512xf32>
    %220 = vector.shape_cast %219 : vector<1x8x512xf32> to vector<8x512xf32>
    %221 = arith.truncf %217 : vector<8x128xf32> to vector<8x128xbf16>
    %cst_84 = arith.constant dense<0.000000e+00> : vector<8x512xf32>
    %222 = tpu.matmul %221, %1, %cst_84 {dimension_numbers = #tpu.dot_dimension_numbers<[1], [0], [0], [1], [0, 0, 1, 1], [], []>} : vector<8x128xbf16>, vector<128x512xbf16>, vector<8x512xf32> -> vector<8x512xf32>
    %223 = arith.addf %220, %222 : vector<8x512xf32>
    %224 = vector.extract_strided_slice %223 {offsets = [0, 0], sizes = [8, 128], strides = [1, 1]} : vector<8x512xf32> to vector<8x128xf32>
    %225 = arith.negf %224 : vector<8x128xf32>
    %226 = math.exp %225 : vector<8x128xf32>
    %cst_85 = arith.constant 1.000000e+00 : f32
    %227 = vector.broadcast %cst_85 : f32 to vector<8x128xf32>
    %228 = arith.addf %227, %226 : vector<8x128xf32>
    %229 = arith.divf %227, %228 : vector<8x128xf32>
    %230 = vector.extract_strided_slice %223 {offsets = [0, 128], sizes = [8, 128], strides = [1, 1]} : vector<8x512xf32> to vector<8x128xf32>
    %231 = arith.negf %230 : vector<8x128xf32>
    %232 = math.exp %231 : vector<8x128xf32>
    %cst_86 = arith.constant 1.000000e+00 : f32
    %233 = vector.broadcast %cst_86 : f32 to vector<8x128xf32>
    %234 = arith.addf %233, %232 : vector<8x128xf32>
    %235 = arith.divf %233, %234 : vector<8x128xf32>
    %236 = vector.extract_strided_slice %223 {offsets = [0, 256], sizes = [8, 128], strides = [1, 1]} : vector<8x512xf32> to vector<8x128xf32>
    %237 = math.tanh %236 : vector<8x128xf32>
    %238 = vector.extract_strided_slice %223 {offsets = [0, 384], sizes = [8, 128], strides = [1, 1]} : vector<8x512xf32> to vector<8x128xf32>
    %239 = arith.negf %238 : vector<8x128xf32>
    %240 = math.exp %239 : vector<8x128xf32>
    %cst_87 = arith.constant 1.000000e+00 : f32
    %241 = vector.broadcast %cst_87 : f32 to vector<8x128xf32>
    %242 = arith.addf %241, %240 : vector<8x128xf32>
    %243 = arith.divf %241, %242 : vector<8x128xf32>
    %244 = arith.mulf %235, %215 : vector<8x128xf32>
    %245 = arith.mulf %229, %237 : vector<8x128xf32>
    %246 = arith.addf %244, %245 : vector<8x128xf32>
    %247 = math.tanh %246 : vector<8x128xf32>
    %248 = arith.mulf %243, %247 : vector<8x128xf32>
    %c6_i32 = arith.constant 6 : i32
    %249 = arith.index_cast %c6_i32 : i32 to index
    %c0_88 = arith.constant 0 : index
    %c0_89 = arith.constant 0 : index
    %250 = vector.load %arg6[%249, %c0_88, %c0_89] : memref<8x8x512xf32, #tpu.memory_space<vmem>>, vector<1x8x512xf32>
    %251 = vector.shape_cast %250 : vector<1x8x512xf32> to vector<8x512xf32>
    %252 = arith.truncf %248 : vector<8x128xf32> to vector<8x128xbf16>
    %cst_90 = arith.constant dense<0.000000e+00> : vector<8x512xf32>
    %253 = tpu.matmul %252, %1, %cst_90 {dimension_numbers = #tpu.dot_dimension_numbers<[1], [0], [0], [1], [0, 0, 1, 1], [], []>} : vector<8x128xbf16>, vector<128x512xbf16>, vector<8x512xf32> -> vector<8x512xf32>
    %254 = arith.addf %251, %253 : vector<8x512xf32>
    %255 = vector.extract_strided_slice %254 {offsets = [0, 0], sizes = [8, 128], strides = [1, 1]} : vector<8x512xf32> to vector<8x128xf32>
    %256 = arith.negf %255 : vector<8x128xf32>
    %257 = math.exp %256 : vector<8x128xf32>
    %cst_91 = arith.constant 1.000000e+00 : f32
    %258 = vector.broadcast %cst_91 : f32 to vector<8x128xf32>
    %259 = arith.addf %258, %257 : vector<8x128xf32>
    %260 = arith.divf %258, %259 : vector<8x128xf32>
    %261 = vector.extract_strided_slice %254 {offsets = [0, 128], sizes = [8, 128], strides = [1, 1]} : vector<8x512xf32> to vector<8x128xf32>
    %262 = arith.negf %261 : vector<8x128xf32>
    %263 = math.exp %262 : vector<8x128xf32>
    %cst_92 = arith.constant 1.000000e+00 : f32
    %264 = vector.broadcast %cst_92 : f32 to vector<8x128xf32>
    %265 = arith.addf %264, %263 : vector<8x128xf32>
    %266 = arith.divf %264, %265 : vector<8x128xf32>
    %267 = vector.extract_strided_slice %254 {offsets = [0, 256], sizes = [8, 128], strides = [1, 1]} : vector<8x512xf32> to vector<8x128xf32>
    %268 = math.tanh %267 : vector<8x128xf32>
    %269 = vector.extract_strided_slice %254 {offsets = [0, 384], sizes = [8, 128], strides = [1, 1]} : vector<8x512xf32> to vector<8x128xf32>
    %270 = arith.negf %269 : vector<8x128xf32>
    %271 = math.exp %270 : vector<8x128xf32>
    %cst_93 = arith.constant 1.000000e+00 : f32
    %272 = vector.broadcast %cst_93 : f32 to vector<8x128xf32>
    %273 = arith.addf %272, %271 : vector<8x128xf32>
    %274 = arith.divf %272, %273 : vector<8x128xf32>
    %275 = arith.mulf %266, %246 : vector<8x128xf32>
    %276 = arith.mulf %260, %268 : vector<8x128xf32>
    %277 = arith.addf %275, %276 : vector<8x128xf32>
    %278 = math.tanh %277 : vector<8x128xf32>
    %279 = arith.mulf %274, %278 : vector<8x128xf32>
    %c7_i32 = arith.constant 7 : i32
    %280 = arith.index_cast %c7_i32 : i32 to index
    %c0_94 = arith.constant 0 : index
    %c0_95 = arith.constant 0 : index
    %281 = vector.load %arg6[%280, %c0_94, %c0_95] : memref<8x8x512xf32, #tpu.memory_space<vmem>>, vector<1x8x512xf32>
    %282 = vector.shape_cast %281 : vector<1x8x512xf32> to vector<8x512xf32>
    %283 = arith.truncf %279 : vector<8x128xf32> to vector<8x128xbf16>
    %cst_96 = arith.constant dense<0.000000e+00> : vector<8x512xf32>
    %284 = tpu.matmul %283, %1, %cst_96 {dimension_numbers = #tpu.dot_dimension_numbers<[1], [0], [0], [1], [0, 0, 1, 1], [], []>} : vector<8x128xbf16>, vector<128x512xbf16>, vector<8x512xf32> -> vector<8x512xf32>
    %285 = arith.addf %282, %284 : vector<8x512xf32>
    %286 = vector.extract_strided_slice %285 {offsets = [0, 0], sizes = [8, 128], strides = [1, 1]} : vector<8x512xf32> to vector<8x128xf32>
    %287 = arith.negf %286 : vector<8x128xf32>
    %288 = math.exp %287 : vector<8x128xf32>
    %cst_97 = arith.constant 1.000000e+00 : f32
    %289 = vector.broadcast %cst_97 : f32 to vector<8x128xf32>
    %290 = arith.addf %289, %288 : vector<8x128xf32>
    %291 = arith.divf %289, %290 : vector<8x128xf32>
    %292 = vector.extract_strided_slice %285 {offsets = [0, 128], sizes = [8, 128], strides = [1, 1]} : vector<8x512xf32> to vector<8x128xf32>
    %293 = arith.negf %292 : vector<8x128xf32>
    %294 = math.exp %293 : vector<8x128xf32>
    %cst_98 = arith.constant 1.000000e+00 : f32
    %295 = vector.broadcast %cst_98 : f32 to vector<8x128xf32>
    %296 = arith.addf %295, %294 : vector<8x128xf32>
    %297 = arith.divf %295, %296 : vector<8x128xf32>
    %298 = vector.extract_strided_slice %285 {offsets = [0, 256], sizes = [8, 128], strides = [1, 1]} : vector<8x512xf32> to vector<8x128xf32>
    %299 = math.tanh %298 : vector<8x128xf32>
    %300 = vector.extract_strided_slice %285 {offsets = [0, 384], sizes = [8, 128], strides = [1, 1]} : vector<8x512xf32> to vector<8x128xf32>
    %301 = arith.negf %300 : vector<8x128xf32>
    %302 = math.exp %301 : vector<8x128xf32>
    %cst_99 = arith.constant 1.000000e+00 : f32
    %303 = vector.broadcast %cst_99 : f32 to vector<8x128xf32>
    %304 = arith.addf %303, %302 : vector<8x128xf32>
    %305 = arith.divf %303, %304 : vector<8x128xf32>
    %306 = arith.mulf %297, %277 : vector<8x128xf32>
    %307 = arith.mulf %291, %299 : vector<8x128xf32>
    %308 = arith.addf %306, %307 : vector<8x128xf32>
    %309 = math.tanh %308 : vector<8x128xf32>
    %310 = arith.mulf %305, %309 : vector<8x128xf32>
    %c7_i32_100 = arith.constant 7 : i32
    %c0_101 = arith.constant 0 : index
    %c0_102 = arith.constant 0 : index
    %311 = vector.load %arg5[%c0_101, %c0_102] : memref<8x128xf32, #tpu.memory_space<vmem>>, vector<8x128xf32>
    tpu.vector_store %arg5[%c0_101, %c0_102], %310 {strides = array<i32>} : memref<8x128xf32, #tpu.memory_space<vmem>>, vector<8x128xf32>,
    return
  }
  func.func @transform_0(%arg0: i32) -> (i32, i32, i32) {
    %c0_i32 = arith.constant 0 : i32
    %c0_i32_0 = arith.constant 0 : i32
    %c0_i32_1 = arith.constant 0 : i32
    return %c0_i32, %arg0, %c0_i32_0 : i32, i32, i32
  }
  func.func @transform_1(%arg0: i32) -> (i32, i32) {
    %c0_i32 = arith.constant 0 : i32
    %c0_i32_0 = arith.constant 0 : i32
    %c0_i32_1 = arith.constant 0 : i32
    return %c0_i32, %c0_i32_0 : i32, i32
  }
  func.func @transform_2(%arg0: i32) -> (i32, i32) {
    %c0_i32 = arith.constant 0 : i32
    %c0_i32_0 = arith.constant 0 : i32
    %c0_i32_1 = arith.constant 0 : i32
    return %c0_i32, %c0_i32_0 : i32, i32
  }
  func.func @transform_3(%arg0: i32) -> (i32, i32) {
    %c0_i32 = arith.constant 0 : i32
    %c0_i32_0 = arith.constant 0 : i32
    %c0_i32_1 = arith.constant 0 : i32
    return %c0_i32, %c0_i32_0 : i32, i32
  }
  func.func @transform_4(%arg0: i32) -> (i32, i32) {
    %c0_i32 = arith.constant 0 : i32
    %c0_i32_0 = arith.constant 0 : i32
    return %arg0, %c0_i32 : i32, i32
  }
}

</mosaic_0001>

<bundles_post_ra>
// kernel: tpu_custom_call.1
= control target key start
LH: loop header
LB: loop body
LE: loop exit
PB: predicated region body
PF: predicated region fallthrough
CT: control target
= control target key end

     0   :  { %9 = vsyncpa [#allocation4], 0  ;;  %s2993_s0 = inlined_call_operand.hbm [shape: f32[8,8,40], index: 0, kind: input, shape index: {}]   ;;  %s2994_s1 = inlined_call_operand.hbm [shape: bf16[40,512], index: 1, kind: input, shape index: {}]   ;;  %s2995_s2 = inlined_call_operand.hbm [shape: bf16[128,512], index: 2, kind: input, shape index: {}]   ;;  %s2996_s3 = inlined_call_operand.vmem [shape: f32[1,512], index: 3, kind: input, shape index: {}]   ;;  %s2997_s4 = inlined_call_operand.hbm [shape: f32[8,128], index: 4, kind: output, shape index: {}]  }
   0x1   :  { %10 = vsyncpa [#allocation7], 0 }
   0x2   :  { %11 = vsyncpa [#allocation5], 0  ;;  %s2345_s15 = smov [#allocation6]  }
   0x3   :  { %s29_s16 = sshll.u32 %s2345_s15, 4  ;;  %s30_s16 = int_to_ptr.vmem [resolvable:$true] %s29_s16 }
   0x4   :  { %s2267_s17 = scalar_lea.vmem %s30_s16, 1280  ;;  %p2272_p1 = scmp.lt.s32.totalorder %s30_s16, %s30_s16 }
   0x5   :  { %p2268_p0 = scmp.ne.s32.totalorder %s30_s16, %s2267_s17  ;;  %p2273_p2 = scmp.lt.s32.totalorder %s2267_s17, %s2267_s17 }
   0x7   :  { %p2274_p3 = por %p2273_p2, %p2272_p1 }
   0x9   :  { %p2275_p4 = pnand %p2274_p3, %p2268_p0 }
   0xb   :  { %2278 = shalt.err (!%p2275_p4)
}
   0xc   :  { %s2346_s18 = smov 256   ;;  %s2347_s19 = smov 16  }
   0xd   :  { %35 = dma.hbm_to_vmem [thread:$0]  %s2994_s1, 1280, %s30_s16, [#allocation7], %s2346_s18, %s2346_s18, %s2347_s19  }
   0xe   :  { %s2348_s22 = smov [#allocation3]  }
   0xf   :  { %s17_s23 = sshll.u32 %s2348_s22, 4  ;;  %s18_s23 = int_to_ptr.vmem [resolvable:$true] %s17_s23 }
  0x10   :  { %s2287_s24 = scalar_lea.vmem %s18_s23, 1024  ;;  %p2292_p6 = scmp.lt.s32.totalorder %s18_s23, %s18_s23 }
  0x11   :  { %p2288_p5 = scmp.ne.s32.totalorder %s18_s23, %s2287_s24  ;;  %p2293_p7 = scmp.lt.s32.totalorder %s2287_s24, %s2287_s24 }
  0x13   :  { %p2294_p8 = por %p2293_p7, %p2292_p6 }
  0x15   :  { %p2295_p9 = pnand %p2294_p8, %p2288_p5 }
  0x17   :  { %2298 = shalt.err (!%p2295_p9)
}
  0x18   :  { %s2349_s25 = smov 128   ;;  %s2350_s26 = smov 8  }
  0x19   :  { %23 = dma.hbm_to_vmem [thread:$0]  %s2993_s0, 1024, %s18_s23, [#allocation4], %s2349_s25, %s2349_s25, %s2350_s26  }
  0x1a   :  { %s2351_s29 = smov [#allocation8]  }
  0x1b   :  { %s41_s30 = sshll.u32 %s2351_s29, 4  ;;  %s42_s30 = int_to_ptr.vmem [resolvable:$true] %s41_s30 }
  0x1c   :  { %s2307_s1 = scalar_lea.vmem %s42_s30, 4096  ;;  %p2312_p11 = scmp.lt.s32.totalorder %s42_s30, %s42_s30 }
  0x1d   :  { %p2308_p10 = scmp.ne.s32.totalorder %s42_s30, %s2307_s1  ;;  %p2313_p12 = scmp.lt.s32.totalorder %s2307_s1, %s2307_s1 }
  0x1f   :  { %p2314_p13 = por %p2313_p12, %p2312_p11 }
  0x21   :  { %p2315_p0 = pnand %p2314_p13, %p2308_p10 }
  0x23   :  { %2318 = shalt.err (!%p2315_p0)
}
  0x24   :  { %47 = dma.hbm_to_vmem [thread:$0]  %s2995_s2, 4096, %s42_s30, [#allocation7], %s2346_s18, %s2346_s18, %s2347_s19  }
  0x25   :  { %2339 = dma.done.wait [#allocation4], 1024  }
  0x26   :  { %2340 = vsyncadd [#allocation4], 4294966272 }
  0x27   :  { %2341 = dma.done.wait [#allocation7], 5376  }
  0x28   :  { %2342 = vsyncadd [#allocation7], 4294961920  ;;  %v2998_v0 = vmov 0   ;;  %v68_v1 = vld [vmem:[#allocation6 + $0x40] sm:$0xff]  ;;  %vm180_vm0 = vcmask 1043456   ;;  %v69_v5 = vld [vmem:[#allocation6 + $0x48] sm:$0xff] }
  0x29   :  { %225 = vmatprep.mubr.bf16.mxu0 %v2998_v0  ;;  %266 = vmatprep.mubr.bf16.mxu1 %v2998_v0  ;;  %v2390_v2 = vcombine.high %v68_v1, %v68_v1  ;;  %v1939_v3 = vcombine.low %v68_v1, %v68_v1  ;;  %v2392_v4 = vld [vmem:[#allocation6 + $0x24] ss:$16 sps:$4 sm:$0xff]   ;;  %v2399_v7 = vcombine.high %v69_v5, %v69_v5  ;;  %v2402_v9 = vld [vmem:[#allocation6 + $0x20] ss:$16 sps:$4 sm:$0xff]   ;;  %v2404_v10 = vld [vmem:[#allocation6 + $0x2c] ss:$16 sps:$4 sm:$0xff]  }
  0x2a   :  { %v1941_v8 = vcombine.low %v69_v5, %v69_v5  ;;  %v2407_v11 = vld [vmem:[#allocation6 + $0x4] ss:$16 sps:$4 sm:$0xff]   ;;  %v2415_v13 = vld [vmem:[#allocation6 + $0x28] ss:$16 sps:$4 sm:$0xff]   ;;  %v2417_v14 = vld [vmem:[#allocation6] ss:$16 sps:$4 sm:$0xff]  }
  0x2b   :  { %1943 = vmatprep.subr.msk.bf16.mxu0 %vm180_vm0, %v2390_v2  ;;  %v2397_v6 = vsel %vm180_vm0, %v1939_v3, 0  ;;  %1945 = vmatprep.subr.msk.bf16.mxu1 %vm180_vm0, %v2399_v7  ;;  %v103_v15 = vld [vmem:[#allocation3] sm:$0xff]  ;;  %v2420_v16 = vld [vmem:[#allocation6 + $0xc] ss:$16 sps:$4 sm:$0xff]   ;;  %v2423_v17 = vld [vmem:[#allocation6 + $0x8] ss:$16 sps:$4 sm:$0xff]  }
  0x2c   :  { %204 = vmatpush1.bf16.msra.mxu0 %v2397_v6  ;;  %v2412_v12 = vsel %vm180_vm0, %v1941_v8, 0  ;;  %v104_v18 = vpack.c.bf16 %v103_v15, %v103_v15  ;;  %vm176_vm1 = vcmask 326656   ;;  %v280_v19 = vld [vmem:[#allocation3 + $0x8] sm:$0xff]  ;;  %v373_v21 = vld [vmem:[#allocation3 + $0x10] sm:$0xff]  ;;  %v466_v23 = vld [vmem:[#allocation3 + $0x18] sm:$0xff] }
  0x2d   :  { %205 = vmatprep.subr.bf16.mxu0 %v2392_v4  ;;  %245 = vmatpush1.bf16.msra.mxu1 %v2412_v12  ;;  %v281_v20 = vpack.c.bf16 %v280_v19, %v280_v19  ;;  %v374_v22 = vpack.c.bf16 %v373_v21, %v373_v21  ;;  %v467_v24 = vpack.c.bf16 %v466_v23, %v466_v23  ;;  %v559_v25 = vld [vmem:[#allocation3 + $0x20] sm:$0xff]  ;;  %v652_v27 = vld [vmem:[#allocation3 + $0x28] sm:$0xff]  ;;  %v745_v29 = vld [vmem:[#allocation3 + $0x30] sm:$0xff] }
  0x2e   :  { %246 = vmatprep.subr.bf16.mxu1 %v2404_v10  ;;  %v560_v26 = vpack.c.bf16 %v559_v25, %v559_v25  ;;  %v653_v28 = vpack.c.bf16 %v652_v27, %v652_v27  ;;  %v746_v30 = vpack.c.bf16 %v745_v29, %v745_v29  ;;  %v838_v31 = vld [vmem:[#allocation3 + $0x38] sm:$0xff]  ;;  %v2557_v33 = vld [vmem:[#allocation8 + $0xe4] ss:$16 sps:$4 sm:$0xff]   ;;  %v2563_v35 = vld [vmem:[#allocation8 + $0xe0] ss:$16 sps:$4 sm:$0xff]  }
  0x2f   :  { %v839_v32 = vpack.c.bf16 %v838_v31, %v838_v31  ;;  %v2559_v34 = vld [vmem:[#allocation8 + $0xec] ss:$16 sps:$4 sm:$0xff]   ;;  %v2565_v36 = vld [vmem:[#allocation8 + $0xe8] ss:$16 sps:$4 sm:$0xff]   ;;  %v2571_v37 = vld [vmem:[#allocation8 + $0xc4] ss:$16 sps:$4 sm:$0xff]  }
  0x30   :  { %206 = vmatpush1.bf16.msra.mxu0 %v2402_v9  ;;  %v2573_v38 = vld [vmem:[#allocation8 + $0xcc] ss:$16 sps:$4 sm:$0xff]   ;;  %v2576_v39 = vld [vmem:[#allocation8 + $0xc0] ss:$16 sps:$4 sm:$0xff]   ;;  %v2578_v40 = vld [vmem:[#allocation8 + $0xc8] ss:$16 sps:$4 sm:$0xff]  }
  0x31   :  { %207 = vmatprep.subr.bf16.mxu0 %v2407_v11  ;;  %247 = vmatpush1.bf16.msra.mxu1 %v2415_v13  ;;  %v2584_v41 = vld [vmem:[#allocation8 + $0xa4] ss:$16 sps:$4 sm:$0xff]   ;;  %v2586_v42 = vld [vmem:[#allocation8 + $0xac] ss:$16 sps:$4 sm:$0xff]   ;;  %v2588_v43 = vld [vmem:[#allocation8 + $0xa0] ss:$16 sps:$4 sm:$0xff]  }
  0x32   :  { %248 = vmatprep.subr.bf16.mxu1 %v2420_v16  ;;  %v2590_v44 = vld [vmem:[#allocation8 + $0xa8] ss:$16 sps:$4 sm:$0xff]   ;;  %v2596_v45 = vld [vmem:[#allocation8 + $0x84] ss:$16 sps:$4 sm:$0xff]   ;;  %v2598_v46 = vld [vmem:[#allocation8 + $0x8c] ss:$16 sps:$4 sm:$0xff]  }
  0x33   :  { %v2600_v47 = vld [vmem:[#allocation8 + $0x80] ss:$16 sps:$4 sm:$0xff]   ;;  %v2602_v48 = vld [vmem:[#allocation8 + $0x88] ss:$16 sps:$4 sm:$0xff]   ;;  %v2608_v49 = vld [vmem:[#allocation8 + $0x64] ss:$16 sps:$4 sm:$0xff]  }
  0x34   :  { %208 = vmatpush1.bf16.msra.mxu0 %v2417_v14  ;;  %v2610_v50 = vld [vmem:[#allocation8 + $0x6c] ss:$16 sps:$4 sm:$0xff]   ;;  %v2612_v51 = vld [vmem:[#allocation8 + $0x60] ss:$16 sps:$4 sm:$0xff]   ;;  %v2614_v52 = vld [vmem:[#allocation8 + $0x68] ss:$16 sps:$4 sm:$0xff]  }
  0x35   :  { %1947 = vmatprep.subr.msk.bf16.mxu0 %vm180_vm0, %v2390_v2  ;;  %249 = vmatpush1.bf16.msra.mxu1 %v2423_v17  ;;  %v2616_v53 = vld [vmem:[#allocation8 + $0x44] ss:$16 sps:$4 sm:$0xff]   ;;  %v2618_v54 = vld [vmem:[#allocation8 + $0x4c] ss:$16 sps:$4 sm:$0xff]   ;;  %v2624_v55 = vld [vmem:[#allocation8 + $0x40] ss:$16 sps:$4 sm:$0xff]  }
  0x36   :  { %1949 = vmatprep.subr.msk.bf16.mxu1 %vm180_vm0, %v2399_v7  ;;  %v2626_v56 = vld [vmem:[#allocation8 + $0x48] ss:$16 sps:$4 sm:$0xff]   ;;  %v2630_v57 = vld [vmem:[#allocation8 + $0x24] ss:$16 sps:$4 sm:$0xff]   ;;  %v2632_v58 = vld [vmem:[#allocation8 + $0x2c] ss:$16 sps:$4 sm:$0xff]  }
  0x37   :  { %1944 = vmatmul.mubr.msk.bf16.vlgmr.msra.gmra.mxu0 %vm176_vm1, %v104_v18  ;;  %v2636_v59 = vld [vmem:[#allocation8 + $0x20] ss:$16 sps:$4 sm:$0xff]   ;;  %v2638_v60 = vld [vmem:[#allocation8 + $0x28] ss:$16 sps:$4 sm:$0xff]   ;;  %v2642_v61 = vld [vmem:[#allocation8 + $0x4] ss:$16 sps:$4 sm:$0xff]  }
  0x38   :  { %296 = vmatpush1.bf16.msra.mxu0 %v2397_v6  ;;  %317 = vmatprep.mubr.bf16.mxu0 %v2998_v0  ;;  %v2644_v62 = vld [vmem:[#allocation8 + $0xc] ss:$16 sps:$4 sm:$0xff]   ;;  %v2648_v63 = vld [vmem:[#allocation8] ss:$16 sps:$4 sm:$0xff]   ;;  %v2650_v1 = vld [vmem:[#allocation8 + $0x8] ss:$16 sps:$4 sm:$0xff]  }
  0x39   :  { %1946 = vmatmul.mubr.msk.bf16.vlgmr.msra.gmra.mxu1 %vm176_vm1, %v104_v18  ;;  %297 = vmatprep.subr.bf16.mxu0 %v2392_v4  ;;  %v2664_v5 = vld [vmem:[%s2996_s3] sm:$0xf]  ;;  %s2353_s3 = smov [#allocation9]  }
  0x3a   :  { %337 = vmatpush1.bf16.msra.mxu1 %v2412_v12  ;;  %358 = vmatprep.mubr.bf16.mxu1 %v2998_v0  ;;  %s1921_s7 = sshll.u32 %s2353_s3, 4  ;;  %s1922_s7 = int_to_ptr.vmem [resolvable:$true] %s1921_s7 }
  0x3b   :  { %338 = vmatprep.subr.bf16.mxu1 %v2404_v10  ;;  %s2319_s8 = scalar_lea.vmem %s1922_s7, 128  ;;  %p2324_p2 = scmp.lt.s32.totalorder %s1922_s7, %s1922_s7 }
  0x3c   :  { %298 = vmatpush1.bf16.msra.mxu0 %v2402_v9  ;;  %p2320_p1 = scmp.ne.s32.totalorder %s1922_s7, %s2319_s8  ;;  %p2325_p3 = scmp.lt.s32.totalorder %s2319_s8, %s2319_s8 }
  0x3d   :  { %299 = vmatprep.subr.bf16.mxu0 %v2407_v11 }
  0x3e   :  { %339 = vmatpush1.bf16.msra.mxu1 %v2415_v13  ;;  %p2326_p4 = por %p2325_p3, %p2324_p2 }
  0x3f   :  { %340 = vmatprep.subr.bf16.mxu1 %v2420_v16 }
  0x40   :  { %300 = vmatpush1.bf16.msra.mxu0 %v2417_v14  ;;  %p2327_p5 = pnand %p2326_p4, %p2320_p1 }
  0x41   :  { %1951 = vmatprep.subr.msk.bf16.mxu0 %vm180_vm0, %v2390_v2 }
  0x42   :  { %341 = vmatpush1.bf16.msra.mxu1 %v2423_v17 }
  0x43   :  { %1948 = vmatmul.mubr.msk.bf16.vlgmr.msra.gmra.mxu0 %vm176_vm1, %v281_v20  ;;  %1953 = vmatprep.subr.msk.bf16.mxu1 %vm180_vm0, %v2399_v7 }
  0x44   :  { %389 = vmatpush1.bf16.msra.mxu0 %v2397_v6  ;;  %410 = vmatprep.mubr.bf16.mxu0 %v2998_v0 }
  0x45   :  { %390 = vmatprep.subr.bf16.mxu0 %v2392_v4  ;;  %1950 = vmatmul.mubr.msk.bf16.vlgmr.msra.gmra.mxu1 %vm176_vm1, %v281_v20 }
  0x46   :  { %430 = vmatpush1.bf16.msra.mxu1 %v2412_v12  ;;  %451 = vmatprep.mubr.bf16.mxu1 %v2998_v0 }
  0x47   :  { %431 = vmatprep.subr.bf16.mxu1 %v2404_v10 }
  0x48   :  { %391 = vmatpush1.bf16.msra.mxu0 %v2402_v9 }
  0x49   :  { %392 = vmatprep.subr.bf16.mxu0 %v2407_v11 }
  0x4a   :  { %432 = vmatpush1.bf16.msra.mxu1 %v2415_v13 }
  0x4b   :  { %433 = vmatprep.subr.bf16.mxu1 %v2420_v16 }
  0x4c   :  { %393 = vmatpush1.bf16.msra.mxu0 %v2417_v14 }
  0x4d   :  { %1955 = vmatprep.subr.msk.bf16.mxu0 %vm180_vm0, %v2390_v2 }
  0x4e   :  { %434 = vmatpush1.bf16.msra.mxu1 %v2423_v17 }
  0x4f   :  { %1952 = vmatmul.mubr.msk.bf16.vlgmr.msra.gmra.mxu0 %vm176_vm1, %v374_v22  ;;  %1957 = vmatprep.subr.msk.bf16.mxu1 %vm180_vm0, %v2399_v7 }
  0x50   :  { %482 = vmatpush1.bf16.msra.mxu0 %v2397_v6  ;;  %503 = vmatprep.mubr.bf16.mxu0 %v2998_v0 }
  0x51   :  { %483 = vmatprep.subr.bf16.mxu0 %v2392_v4  ;;  %1954 = vmatmul.mubr.msk.bf16.vlgmr.msra.gmra.mxu1 %vm176_vm1, %v374_v22 }
  0x52   :  { %523 = vmatpush1.bf16.msra.mxu1 %v2412_v12  ;;  %544 = vmatprep.mubr.bf16.mxu1 %v2998_v0 }
  0x53   :  { %524 = vmatprep.subr.bf16.mxu1 %v2404_v10 }
  0x54   :  { %484 = vmatpush1.bf16.msra.mxu0 %v2402_v9 }
  0x55   :  { %485 = vmatprep.subr.bf16.mxu0 %v2407_v11 }
  0x56   :  { %525 = vmatpush1.bf16.msra.mxu1 %v2415_v13 }
  0x57   :  { %526 = vmatprep.subr.bf16.mxu1 %v2420_v16 }
  0x58   :  { %486 = vmatpush1.bf16.msra.mxu0 %v2417_v14 }
  0x59   :  { %1959 = vmatprep.subr.msk.bf16.mxu0 %vm180_vm0, %v2390_v2 }
  0x5a   :  { %527 = vmatpush1.bf16.msra.mxu1 %v2423_v17 }
  0x5b   :  { %1956 = vmatmul.mubr.msk.bf16.vlgmr.msra.gmra.mxu0 %vm176_vm1, %v467_v24  ;;  %1961 = vmatprep.subr.msk.bf16.mxu1 %vm180_vm0, %v2399_v7 }
  0x5c   :  { %575 = vmatpush1.bf16.msra.mxu0 %v2397_v6  ;;  %596 = vmatprep.mubr.bf16.mxu0 %v2998_v0 }
  0x5d   :  { %576 = vmatprep.subr.bf16.mxu0 %v2392_v4  ;;  %1958 = vmatmul.mubr.msk.bf16.vlgmr.msra.gmra.mxu1 %vm176_vm1, %v467_v24 }
  0x5e   :  { %616 = vmatpush1.bf16.msra.mxu1 %v2412_v12  ;;  %637 = vmatprep.mubr.bf16.mxu1 %v2998_v0 }
  0x5f   :  { %617 = vmatprep.subr.bf16.mxu1 %v2404_v10 }
  0x60   :  { %577 = vmatpush1.bf16.msra.mxu0 %v2402_v9 }
  0x61   :  { %578 = vmatprep.subr.bf16.mxu0 %v2407_v11 }
  0x62   :  { %618 = vmatpush1.bf16.msra.mxu1 %v2415_v13 }
  0x63   :  { %619 = vmatprep.subr.bf16.mxu1 %v2420_v16 }
  0x64   :  { %579 = vmatpush1.bf16.msra.mxu0 %v2417_v14 }
  0x65   :  { %1963 = vmatprep.subr.msk.bf16.mxu0 %vm180_vm0, %v2390_v2 }
  0x66   :  { %620 = vmatpush1.bf16.msra.mxu1 %v2423_v17 }
  0x67   :  { %1960 = vmatmul.mubr.msk.bf16.vlgmr.msra.gmra.mxu0 %vm176_vm1, %v560_v26  ;;  %1965 = vmatprep.subr.msk.bf16.mxu1 %vm180_vm0, %v2399_v7 }
  0x68   :  { %668 = vmatpush1.bf16.msra.mxu0 %v2397_v6  ;;  %689 = vmatprep.mubr.bf16.mxu0 %v2998_v0 }
  0x69   :  { %669 = vmatprep.subr.bf16.mxu0 %v2392_v4  ;;  %1962 = vmatmul.mubr.msk.bf16.vlgmr.msra.gmra.mxu1 %vm176_vm1, %v560_v26 }
  0x6a   :  { %709 = vmatpush1.bf16.msra.mxu1 %v2412_v12  ;;  %730 = vmatprep.mubr.bf16.mxu1 %v2998_v0 }
  0x6b   :  { %710 = vmatprep.subr.bf16.mxu1 %v2404_v10 }
  0x6c   :  { %670 = vmatpush1.bf16.msra.mxu0 %v2402_v9 }
  0x6d   :  { %671 = vmatprep.subr.bf16.mxu0 %v2407_v11 }
  0x6e   :  { %711 = vmatpush1.bf16.msra.mxu1 %v2415_v13 }
  0x6f   :  { %712 = vmatprep.subr.bf16.mxu1 %v2420_v16 }
  0x70   :  { %672 = vmatpush1.bf16.msra.mxu0 %v2417_v14 }
  0x71   :  { %1967 = vmatprep.subr.msk.bf16.mxu0 %vm180_vm0, %v2390_v2 }
  0x72   :  { %713 = vmatpush1.bf16.msra.mxu1 %v2423_v17 }
  0x73   :  { %1964 = vmatmul.mubr.msk.bf16.vlgmr.msra.gmra.mxu0 %vm176_vm1, %v653_v28  ;;  %1969 = vmatprep.subr.msk.bf16.mxu1 %vm180_vm0, %v2399_v7 }
  0x74   :  { %761 = vmatpush1.bf16.msra.mxu0 %v2397_v6  ;;  %782 = vmatprep.mubr.bf16.mxu0 %v2998_v0 }
  0x75   :  { %762 = vmatprep.subr.bf16.mxu0 %v2392_v4  ;;  %1966 = vmatmul.mubr.msk.bf16.vlgmr.msra.gmra.mxu1 %vm176_vm1, %v653_v28 }
  0x76   :  { %802 = vmatpush1.bf16.msra.mxu1 %v2412_v12  ;;  %823 = vmatprep.mubr.bf16.mxu1 %v2998_v0 }
  0x77   :  { %803 = vmatprep.subr.bf16.mxu1 %v2404_v10 }
  0x78   :  { %763 = vmatpush1.bf16.msra.mxu0 %v2402_v9 }
  0x79   :  { %764 = vmatprep.subr.bf16.mxu0 %v2407_v11 }
  0x7a   :  { %804 = vmatpush1.bf16.msra.mxu1 %v2415_v13 }
  0x7b   :  { %805 = vmatprep.subr.bf16.mxu1 %v2420_v16 }
  0x7c   :  { %765 = vmatpush1.bf16.msra.mxu0 %v2417_v14 }
  0x7d   :  { %1971 = vmatprep.subr.msk.bf16.mxu0 %vm180_vm0, %v2390_v2  ;;  %v106_v2 = vlaneseq }
  0x7e   :  { %806 = vmatpush1.bf16.msra.mxu1 %v2423_v17 }
  0x7f   :  { %1968 = vmatmul.mubr.msk.bf16.vlgmr.msra.gmra.mxu0 %vm176_vm1, %v746_v30  ;;  %1973 = vmatprep.subr.msk.bf16.mxu1 %vm180_vm0, %v2399_v7  ;;  %v2658_v3 = vshrl.u32 %v106_v2, 7 }
  0x80   :  { %854 = vmatpush1.bf16.msra.mxu0 %v2397_v6  ;;  %875 = vmatprep.mubr.bf16.mxu0 %v2998_v0 }
  0x81   :  { %855 = vmatprep.subr.bf16.mxu0 %v2392_v4  ;;  %1970 = vmatmul.mubr.msk.bf16.vlgmr.msra.gmra.mxu1 %vm176_vm1, %v746_v30  ;;  %v108_v4 = vsub.s32 0, %v2658_v3  ;;  %v120_v8 = vsub.s32 3, %v2658_v3  ;;  %v116_v18 = vsub.s32 2, %v2658_v3 }
  0x82   :  { %895 = vmatpush1.bf16.msra.mxu1 %v2412_v12  ;;  %916 = vmatprep.mubr.bf16.mxu1 %v2998_v0 }
  0x83   :  { %896 = vmatprep.subr.bf16.mxu1 %v2404_v10  ;;  %v2667_v6 = vrot.slane %v2664_v5, %v108_v4  ;;  %v2677_v21 = vrot.slane %v2664_v5, %v116_v18 }
  0x84   :  { %856 = vmatpush1.bf16.msra.mxu0 %v2402_v9 }
  0x85   :  { %857 = vmatprep.subr.bf16.mxu0 %v2407_v11 }
  0x86   :  { %897 = vmatpush1.bf16.msra.mxu1 %v2415_v13 }
  0x87   :  { %898 = vmatprep.subr.bf16.mxu1 %v2420_v16 }
  0x88   :  { %858 = vmatpush1.bf16.msra.mxu0 %v2417_v14  ;;  %v2672_v14 = vrot.slane %v2664_v5, %v120_v8 }
  0x89   :  { %1114 = vmatprep.subr.bf16.mxu0 %v2557_v33 }
  0x8a   :  { %899 = vmatpush1.bf16.msra.mxu1 %v2423_v17 }
  0x8b   :  { %1972 = vmatmul.mubr.msk.bf16.vlgmr.msra.gmra.mxu0 %vm176_vm1, %v839_v32  ;;  %1155 = vmatprep.subr.bf16.mxu1 %v2559_v34 }
  0x8c   :  { %1146 = vmatprep.mubr.bf16.mxu0 %v2998_v0  ;;  %1115 = vmatpush1.bf16.msra.mxu0 %v2563_v35 }
  0x8d   :  { %1974 = vmatmul.mubr.msk.bf16.vlgmr.msra.gmra.mxu1 %vm176_vm1, %v839_v32  ;;  %1116 = vmatprep.subr.bf16.mxu0 %v2571_v37 }
  0x8e   :  { %1156 = vmatpush1.bf16.msra.mxu1 %v2565_v36  ;;  %1187 = vmatprep.mubr.bf16.mxu1 %v2998_v0 }
  0x8f   :  { %1157 = vmatprep.subr.bf16.mxu1 %v2573_v38 }
  0x90   :  { %1117 = vmatpush1.bf16.msra.mxu0 %v2576_v39 }
  0x91   :  { %1118 = vmatprep.subr.bf16.mxu0 %v2584_v41 }
  0x92   :  { %1158 = vmatpush1.bf16.msra.mxu1 %v2578_v40 }
  0x93   :  { %1159 = vmatprep.subr.bf16.mxu1 %v2586_v42 }
  0x94   :  { %1119 = vmatpush1.bf16.msra.mxu0 %v2588_v43 }
  0x95   :  { %1120 = vmatprep.subr.bf16.mxu0 %v2596_v45 }
  0x96   :  { %1160 = vmatpush1.bf16.msra.mxu1 %v2590_v44 }
  0x97   :  { %1161 = vmatprep.subr.bf16.mxu1 %v2598_v46 }
  0x98   :  { %1121 = vmatpush1.bf16.msra.mxu0 %v2600_v47 }
  0x99   :  { %1122 = vmatprep.subr.bf16.mxu0 %v2608_v49 }
  0x9a   :  { %1162 = vmatpush1.bf16.msra.mxu1 %v2602_v48 }
  0x9b   :  { %1163 = vmatprep.subr.bf16.mxu1 %v2610_v50 }
  0x9c   :  { %1123 = vmatpush1.bf16.msra.mxu0 %v2612_v51 }
  0x9d   :  { %1124 = vmatprep.subr.bf16.mxu0 %v2616_v53 }
  0x9e   :  { %1164 = vmatpush1.bf16.msra.mxu1 %v2614_v52 }
  0x9f   :  { %1165 = vmatprep.subr.bf16.mxu1 %v2618_v54 }
  0xa0   :  { %1125 = vmatpush1.bf16.msra.mxu0 %v2624_v55 }
  0xa1   :  { %1126 = vmatprep.subr.bf16.mxu0 %v2630_v57 }
  0xa2   :  { %1166 = vmatpush1.bf16.msra.mxu1 %v2626_v56 }
  0xa3   :  { %1167 = vmatprep.subr.bf16.mxu1 %v2632_v58 }
  0xa4   :  { %1127 = vmatpush1.bf16.msra.mxu0 %v2636_v59 }
  0xa5   :  { %1128 = vmatprep.subr.bf16.mxu0 %v2642_v61 }
  0xa6   :  { %1168 = vmatpush1.bf16.msra.mxu1 %v2638_v60 }
  0xa7   :  { %1169 = vmatprep.subr.bf16.mxu1 %v2644_v62 }
  0xa8   :  { %1129 = vmatpush1.bf16.msra.mxu0 %v2648_v63 }
  0xa9   :  { %1229 = vmatprep.subr.bf16.mxu0 %v2557_v33 }
  0xaa   :  { %1170 = vmatpush1.bf16.msra.mxu1 %v2650_v1 }
  0xab   :  { %1270 = vmatprep.subr.bf16.mxu1 %v2559_v34 }
  0xf7   :  { %v227_v7 = vpop.f32.mrf.mxu0 }
  0xf8   :  { %v228_v9 = vadd.f32 %v227_v7, %v2667_v6 }
  0xf9   :  { %v229_v10 = vpop.f32.mrf.mxu0  ;;  %v268_v11 = vpop.f32.mrf.mxu1 }
  0xfa   :  { %v1975_v12 = vmul.f32 -1.442695, %v228_v9  ;;  %v269_v26 = vadd.f32 %v268_v11, %v2677_v21 }
  0xfb   :  { %v231_v13 = vpop.f32.mrf.mxu0  ;;  %v270_v15 = vpop.f32.mrf.mxu1 }
  0xfc   :  { %2103 = vpow2.f32 %v1975_v12  ;;  %v271_v19 = vadd.f32 %v270_v15, %v2672_v14 }
  0xfd   :  { %v232_v16 = vpop.f32.mrf.mxu0  ;;  %v272_v17 = vpop.f32.mrf.mxu1 }
  0xfe   :  { %v1976_v22 = vmul.f32 -1.442695, %v271_v19 }
  0xff   :  { %v273_v20 = vpop.f32.mrf.mxu1 }
 0x100   :  { %2105 = vpow2.f32 %v1976_v22 }
 0x101   :  { %2107 = vtanh.f32 %v269_v26 }
 0x103   :  { %v2679_v23 = vpop.f32.mrf.mxu0 }
 0x105   :  { %v2681_v24 = vpop.f32.mrf.mxu0  ;;  %v2683_v25 = vpop.f32.mrf.mxu1 }
 0x107   :  { %v323_v27 = vpop.f32.mrf.mxu0  ;;  %v2686_v28 = vpop.f32.mrf.mxu1 }
 0x109   :  { %v2104_v29 = vpop.eup %2103  ;;  %v324_v30 = vpop.f32.mrf.mxu0 }
 0x10a   :  { %v364_v31 = vpop.f32.mrf.mxu1  ;;  %v936_v32 = vadd.f32 1.0, %v2104_v29 }
 0x10c   :  { %v365_v2 = vpop.f32.mrf.mxu1  ;;  %2109 = vrcp.f32 %v936_v32 }
 0x10d   :  { %v2106_v11 = vpop.eup %2105 }
 0x10e   :  { %v943_v15 = vadd.f32 1.0, %v2106_v11  ;;  %v2108_v17 = vpop.eup %2107 }
 0x10f   :  { %v2688_v4 = vpop.f32.mrf.mxu0 }
 0x110   :  { %2111 = vrcp.f32 %v943_v15 }
 0x111   :  { %v2690_v7 = vpop.f32.mrf.mxu0  ;;  %v2692_v8 = vpop.f32.mrf.mxu1 }
 0x113   :  { %v416_v9 = vpop.f32.mrf.mxu0  ;;  %v2694_v10 = vpop.f32.mrf.mxu1 }
 0x115   :  { %v417_v12 = vpop.f32.mrf.mxu0  ;;  %v457_v13 = vpop.f32.mrf.mxu1 }
 0x117   :  { %v458_v16 = vpop.f32.mrf.mxu1 }
 0x119   :  { %v2110_v18 = vpop.eup %2109 }
 0x11a   :  { %v2696_v19 = vmul.f32 %v2110_v18, %v2108_v17 }
 0x11b   :  { %v2698_v20 = vpop.f32.mrf.mxu0 }
 0x11c   :  { %2113 = vtanh.f32 %v2696_v19 }
 0x11d   :  { %v2701_v22 = vpop.f32.mrf.mxu0  ;;  %v2703_v26 = vpop.f32.mrf.mxu1 }
 0x11e   :  { %3000 = vst [vmem:[#allocation13_spill] sm:$0xff] %v2701_v22  ;;  %3001 = vst [vmem:[#allocation14_spill] sm:$0xff] %v2703_v26  ;;  %v2112_v9 = vpop.eup %2111 }
 0x11f   :  { %v509_v27 = vpop.f32.mrf.mxu0  ;;  %v2705_v29 = vpop.f32.mrf.mxu1 }
 0x120   :  { %3002 = vst [vmem:[#allocation15_spill] sm:$0xff] %v2705_v29  ;;  %v361_v29 = vadd.f32 %v2683_v25, %v2677_v21 }
 0x121   :  { %v510_v30 = vpop.f32.mrf.mxu0  ;;  %v550_v31 = vpop.f32.mrf.mxu1 }
 0x122   :  { %v3007_v31 = vmov 0  }
 0x123   :  { %v551_v32 = vpop.f32.mrf.mxu1 }
 0x127   :  { %v2707_v2 = vpop.f32.mrf.mxu0 }
 0x128   :  { %3003 = vst [vmem:[#allocation16_spill] sm:$0xff] %v2707_v2 }
 0x129   :  { %v2114_v11 = vpop.eup %2113  ;;  %v2709_v12 = vpop.f32.mrf.mxu0 }
 0x12a   :  { %3004 = vst [vmem:[#allocation17_spill] sm:$0xff] %v2709_v12  ;;  %v2711_v13 = vpop.f32.mrf.mxu1  ;;  %v948_v15 = vmul.f32 %v2114_v11, %v2112_v9 }
 0x12b   :  { %3005 = vst [vmem:[#allocation18_spill] sm:$0xff] %v2711_v13  ;;  %v602_v16 = vpop.f32.mrf.mxu0  ;;  %v320_v13 = vadd.f32 %v2679_v23, %v2667_v6  ;;  %v363_v23 = vadd.f32 %v2686_v28, %v2672_v14 }
 0x12c   :  { %v2713_v17 = vpop.f32.mrf.mxu1  ;;  %v953_v18 = vpack.c.bf16 %v948_v15, %v948_v15 }
 0x12d   :  { %3006 = vst [vmem:[#allocation19_spill] sm:$0xff] %v2713_v17  ;;  %v603_v0 = vpop.f32.mrf.mxu0 }
 0x12e   :  { %v643_v27 = vpop.f32.mrf.mxu1  ;;  %1147 = vmatmul.mubr.bf16.vlgmr.msra.gmra.mxu0 %v953_v18  ;;  %1188 = vmatmul.mubr.bf16.vlgmr.msra.gmra.mxu1 %v953_v18 }
 0x12f   :  { %1230 = vmatpush1.bf16.msra.mxu0 %v2563_v35  ;;  %1271 = vmatpush1.bf16.msra.mxu1 %v2565_v36 }
 0x130   :  { %v644_v30 = vpop.f32.mrf.mxu1  ;;  %1231 = vmatprep.subr.bf16.mxu0 %v2571_v37  ;;  %1272 = vmatprep.subr.bf16.mxu1 %v2573_v38 }
 0x131   :  { %1261 = vmatprep.mubr.bf16.mxu0 %v3007_v31  ;;  %1302 = vmatprep.mubr.bf16.mxu1 %v3007_v31 }
 0x133   :  { %v2721_v32 = vpop.f32.mrf.mxu0  ;;  %1232 = vmatpush1.bf16.msra.mxu0 %v2576_v39  ;;  %1273 = vmatpush1.bf16.msra.mxu1 %v2578_v40 }
 0x134   :  { %3008 = vst [vmem:[#allocation20_spill] sm:$0xff] %v2721_v32  ;;  %1233 = vmatprep.subr.bf16.mxu0 %v2584_v41  ;;  %1274 = vmatprep.subr.bf16.mxu1 %v2586_v42 }
 0x135   :  { %v2727_v0 = vpop.f32.mrf.mxu0  ;;  %v2729_v9 = vpop.f32.mrf.mxu1 }
 0x136   :  { %3009 = vst [vmem:[#allocation21_spill] sm:$0xff] %v2727_v0  ;;  %3010 = vst [vmem:[#allocation22_spill] sm:$0xff] %v2729_v9 }
 0x137   :  { %v695_v11 = vpop.f32.mrf.mxu0  ;;  %v2731_v15 = vpop.f32.mrf.mxu1  ;;  %1234 = vmatpush1.bf16.msra.mxu0 %v2588_v43  ;;  %1275 = vmatpush1.bf16.msra.mxu1 %v2590_v44 }
 0x138   :  { %3011 = vst [vmem:[#allocation23_spill] sm:$0xff] %v2731_v15  ;;  %1235 = vmatprep.subr.bf16.mxu0 %v2596_v45  ;;  %1276 = vmatprep.subr.bf16.mxu1 %v2598_v46 }
 0x139   :  { %v696_v16 = vpop.f32.mrf.mxu0  ;;  %v736_v18 = vpop.f32.mrf.mxu1 }
 0x13b   :  { %v737_v27 = vpop.f32.mrf.mxu1  ;;  %1236 = vmatpush1.bf16.msra.mxu0 %v2600_v47  ;;  %1277 = vmatpush1.bf16.msra.mxu1 %v2602_v48 }
 0x13c   :  { %1237 = vmatprep.subr.bf16.mxu0 %v2608_v49  ;;  %1278 = vmatprep.subr.bf16.mxu1 %v2610_v50 }
 0x13f   :  { %v2741_v30 = vpop.f32.mrf.mxu0  ;;  %1238 = vmatpush1.bf16.msra.mxu0 %v2612_v51  ;;  %1279 = vmatpush1.bf16.msra.mxu1 %v2614_v52 }
 0x140   :  { %3012 = vst [vmem:[#allocation24_spill] sm:$0xff] %v2741_v30  ;;  %1239 = vmatprep.subr.bf16.mxu0 %v2616_v53  ;;  %1280 = vmatprep.subr.bf16.mxu1 %v2618_v54 }
 0x141   :  { %v2747_v11 = vpop.f32.mrf.mxu0  ;;  %v2749_v16 = vpop.f32.mrf.mxu1 }
 0x142   :  { %3013 = vst [vmem:[#allocation25_spill] sm:$0xff] %v2747_v11  ;;  %3014 = vst [vmem:[#allocation26_spill] sm:$0xff] %v2749_v16 }
 0x143   :  { %v788_v18 = vpop.f32.mrf.mxu0  ;;  %v2751_v27 = vpop.f32.mrf.mxu1  ;;  %1240 = vmatpush1.bf16.msra.mxu0 %v2624_v55  ;;  %1281 = vmatpush1.bf16.msra.mxu1 %v2626_v56 }
 0x144   :  { %3015 = vst [vmem:[#allocation27_spill] sm:$0xff] %v2751_v27  ;;  %1241 = vmatprep.subr.bf16.mxu0 %v2630_v57  ;;  %1282 = vmatprep.subr.bf16.mxu1 %v2632_v58 }
 0x145   :  { %v789_v30 = vpop.f32.mrf.mxu0  ;;  %v829_v9 = vpop.f32.mrf.mxu1 }
 0x147   :  { %v830_v15 = vpop.f32.mrf.mxu1  ;;  %1242 = vmatpush1.bf16.msra.mxu0 %v2636_v59  ;;  %1283 = vmatpush1.bf16.msra.mxu1 %v2638_v60 }
 0x148   :  { %1243 = vmatprep.subr.bf16.mxu0 %v2642_v61  ;;  %1284 = vmatprep.subr.bf16.mxu1 %v2644_v62 }
 0x14b   :  { %v2761_v18 = vpop.f32.mrf.mxu0  ;;  %1244 = vmatpush1.bf16.msra.mxu0 %v2648_v63  ;;  %1285 = vmatpush1.bf16.msra.mxu1 %v2650_v1 }
 0x14c   :  { %3016 = vst [vmem:[#allocation28_spill] sm:$0xff] %v2761_v18  ;;  %1344 = vmatprep.subr.bf16.mxu0 %v2557_v33  ;;  %1385 = vmatprep.subr.bf16.mxu1 %v2559_v34  ;;  %v112_v18 = vsub.s32 1, %v2658_v3 }
 0x14d   :  { %v2767_v9 = vpop.f32.mrf.mxu0  ;;  %v2769_v15 = vpop.f32.mrf.mxu1 }
 0x14e   :  { %3017 = vst [vmem:[#allocation29_spill] sm:$0xff] %v2767_v9  ;;  %3018 = vst [vmem:[#allocation30_spill] sm:$0xff] %v2769_v15  ;;  %v2775_v32 = vrot.slane %v2664_v5, %v112_v18 }
 0x14f   :  { %v881_v30 = vpop.f32.mrf.mxu0  ;;  %v2771_v16 = vpop.f32.mrf.mxu1 }
 0x150   :  { %3019 = vst [vmem:[#allocation31_spill] sm:$0xff] %v2771_v16  ;;  %v322_v9 = vadd.f32 %v2681_v24, %v2775_v32 }
 0x151   :  { %v882_v27 = vpop.f32.mrf.mxu0  ;;  %v922_v11 = vpop.f32.mrf.mxu1 }
 0x153   :  { %v923_v0 = vpop.f32.mrf.mxu1 }
 0x1ee   :  { %v1148_v17 = vpop.f32.mrf.mxu0  ;;  %v1189_v12 = vpop.f32.mrf.mxu1 }
 0x1ef   :  { %v1196_v15 = vadd.f32 %v1148_v17, %v320_v13  ;;  %v1198_v24 = vadd.f32 %v1189_v12, %v361_v29 }
 0x1f0   :  { %v1150_v30 = vpop.f32.mrf.mxu0  ;;  %v1191_v2 = vpop.f32.mrf.mxu1 }
 0x1f1   :  { %v2009_v16 = vmul.f32 -1.442695, %v1196_v15  ;;  %v1197_v27 = vadd.f32 %v1150_v30, %v322_v9  ;;  %v1199_v18 = vadd.f32 %v1191_v2, %v363_v23  ;;  %v415_v23 = vadd.f32 %v2690_v7, %v2775_v32 }
 0x1f2   :  { %v1152_v11 = vpop.f32.mrf.mxu0  ;;  %v1193_v0 = vpop.f32.mrf.mxu1 }
 0x1f3   :  { %2115 = vpow2.f32 %v2009_v16  ;;  %v2010_v3 = vmul.f32 -1.442695, %v1197_v27  ;;  %v2011_v13 = vmul.f32 -1.442695, %v1199_v18 }
 0x1f4   :  { %v1153_v26 = vpop.f32.mrf.mxu0  ;;  %v1194_v5 = vpop.f32.mrf.mxu1 }
 0x1f5   :  { %2117 = vpow2.f32 %v2010_v3 }
 0x1f6   :  { %2119 = vtanh.f32 %v1198_v24 }
 0x1f7   :  { %2121 = vpow2.f32 %v2011_v13 }
 0x200   :  { %v2116_v17 = vpop.eup %2115 }
 0x201   :  { %v1203_v22 = vadd.f32 1.0, %v2116_v17 }
 0x202   :  { %v2118_v9 = vpop.eup %2117 }
 0x203   :  { %2123 = vrcp.f32 %v1203_v22  ;;  %v1209_v16 = vadd.f32 1.0, %v2118_v9  ;;  %v2120_v26 = vpop.eup %2119 }
 0x204   :  { %v2122_v15 = vpop.eup %2121 }
 0x205   :  { %2125 = vrcp.f32 %v1209_v16  ;;  %v1216_v28 = vadd.f32 1.0, %v2122_v15 }
 0x207   :  { %2127 = vrcp.f32 %v1216_v28  ;;  %v454_v28 = vadd.f32 %v2692_v8, %v2677_v21 }
 0x210   :  { %v2124_v30 = vpop.eup %2123 }
 0x211   :  { %v1220_v27 = vmul.f32 %v2124_v30, %v2120_v26 }
 0x212   :  { %v2126_v11 = vpop.eup %2125 }
 0x213   :  { %v1219_v2 = vmul.f32 %v2126_v11, %v2696_v19  ;;  %v413_v19 = vadd.f32 %v2688_v4, %v2667_v6  ;;  %v456_v4 = vadd.f32 %v2694_v10, %v2672_v14 }
 0x214   :  { %v2128_v25 = vpop.eup %2127 }
 0x215   :  { %v2786_v0 = vadd.f32 %v1220_v27, %v1219_v2 }
 0x217   :  { %2129 = vtanh.f32 %v2786_v0 }
 0x224   :  { %v2130_v29 = vpop.eup %2129 }
 0x225   :  { %v1223_v12 = vmul.f32 %v2130_v29, %v2128_v25 }
 0x227   :  { %v1228_v3 = vpack.c.bf16 %v1223_v12, %v1223_v12 }
 0x229   :  { %1262 = vmatmul.mubr.bf16.vlgmr.msra.gmra.mxu0 %v1228_v3  ;;  %1303 = vmatmul.mubr.bf16.vlgmr.msra.gmra.mxu1 %v1228_v3 }
 0x22a   :  { %1345 = vmatpush1.bf16.msra.mxu0 %v2563_v35  ;;  %1386 = vmatpush1.bf16.msra.mxu1 %v2565_v36 }
 0x22b   :  { %1346 = vmatprep.subr.bf16.mxu0 %v2571_v37  ;;  %1387 = vmatprep.subr.bf16.mxu1 %v2573_v38 }
 0x22c   :  { %1376 = vmatprep.mubr.bf16.mxu0 %v3007_v31  ;;  %1417 = vmatprep.mubr.bf16.mxu1 %v3007_v31 }
 0x22e   :  { %1347 = vmatpush1.bf16.msra.mxu0 %v2576_v39  ;;  %1388 = vmatpush1.bf16.msra.mxu1 %v2578_v40 }
 0x22f   :  { %1348 = vmatprep.subr.bf16.mxu0 %v2584_v41  ;;  %1389 = vmatprep.subr.bf16.mxu1 %v2586_v42 }
 0x232   :  { %1349 = vmatpush1.bf16.msra.mxu0 %v2588_v43  ;;  %1390 = vmatpush1.bf16.msra.mxu1 %v2590_v44 }
 0x233   :  { %1350 = vmatprep.subr.bf16.mxu0 %v2596_v45  ;;  %1391 = vmatprep.subr.bf16.mxu1 %v2598_v46 }
 0x236   :  { %1351 = vmatpush1.bf16.msra.mxu0 %v2600_v47  ;;  %1392 = vmatpush1.bf16.msra.mxu1 %v2602_v48 }
 0x237   :  { %1352 = vmatprep.subr.bf16.mxu0 %v2608_v49  ;;  %1393 = vmatprep.subr.bf16.mxu1 %v2610_v50 }
 0x23a   :  { %1353 = vmatpush1.bf16.msra.mxu0 %v2612_v51  ;;  %1394 = vmatpush1.bf16.msra.mxu1 %v2614_v52 }
 0x23b   :  { %1354 = vmatprep.subr.bf16.mxu0 %v2616_v53  ;;  %1395 = vmatprep.subr.bf16.mxu1 %v2618_v54 }
 0x23e   :  { %1355 = vmatpush1.bf16.msra.mxu0 %v2624_v55  ;;  %1396 = vmatpush1.bf16.msra.mxu1 %v2626_v56 }
 0x23f   :  { %1356 = vmatprep.subr.bf16.mxu0 %v2630_v57  ;;  %1397 = vmatprep.subr.bf16.mxu1 %v2632_v58 }
 0x242   :  { %1357 = vmatpush1.bf16.msra.mxu0 %v2636_v59  ;;  %1398 = vmatpush1.bf16.msra.mxu1 %v2638_v60 }
 0x243   :  { %1358 = vmatprep.subr.bf16.mxu0 %v2642_v61  ;;  %1399 = vmatprep.subr.bf16.mxu1 %v2644_v62 }
 0x246   :  { %1359 = vmatpush1.bf16.msra.mxu0 %v2648_v63  ;;  %1400 = vmatpush1.bf16.msra.mxu1 %v2650_v1 }
 0x247   :  { %1459 = vmatprep.subr.bf16.mxu0 %v2557_v33  ;;  %1500 = vmatprep.subr.bf16.mxu1 %v2559_v34 }
 0x2e9   :  { %v1263_v22 = vpop.f32.mrf.mxu0  ;;  %v1304_v5 = vpop.f32.mrf.mxu1 }
 0x2ea   :  { %v1311_v18 = vadd.f32 %v1263_v22, %v413_v19  ;;  %v1313_v7 = vadd.f32 %v1304_v5, %v454_v28 }
 0x2eb   :  { %v1265_v24 = vpop.f32.mrf.mxu0  ;;  %v1306_v13 = vpop.f32.mrf.mxu1 }
 0x2ec   :  { %v2012_v17 = vmul.f32 -1.442695, %v1311_v18  ;;  %v1312_v9 = vadd.f32 %v1265_v24, %v415_v23  ;;  %v1314_v11 = vadd.f32 %v1306_v13, %v456_v4 }
 0x2ed   :  { %v1267_v16 = vpop.f32.mrf.mxu0  ;;  %v1308_v26 = vpop.f32.mrf.mxu1 }
 0x2ee   :  { %2131 = vpow2.f32 %v2012_v17  ;;  %v2013_v15 = vmul.f32 -1.442695, %v1312_v9  ;;  %v2014_v2 = vmul.f32 -1.442695, %v1314_v11 }
 0x2ef   :  { %v1268_v30 = vpop.f32.mrf.mxu0  ;;  %v1309_v27 = vpop.f32.mrf.mxu1 }
 0x2f0   :  { %2133 = vpow2.f32 %v2013_v15  ;;  %v3020_v30 = vld [vmem:[#allocation13_spill] sm:$0xff] }
 0x2f1   :  { %2135 = vtanh.f32 %v1313_v7  ;;  %v508_v27 = vadd.f32 %v3020_v30, %v2775_v32 }
 0x2f2   :  { %2137 = vpow2.f32 %v2014_v2 }
 0x2fb   :  { %v2132_v25 = vpop.eup %2131 }
 0x2fc   :  { %v1318_v29 = vadd.f32 1.0, %v2132_v25 }
 0x2fd   :  { %v2134_v12 = vpop.eup %2133 }
 0x2fe   :  { %2139 = vrcp.f32 %v1318_v29  ;;  %v1324_v3 = vadd.f32 1.0, %v2134_v12  ;;  %v2136_v19 = vpop.eup %2135 }
 0x2ff   :  { %v2138_v22 = vpop.eup %2137 }
 0x300   :  { %2141 = vrcp.f32 %v1324_v3  ;;  %v1331_v10 = vadd.f32 1.0, %v2138_v22  ;;  %v3021_v22 = vld [vmem:[#allocation15_spill] sm:$0xff] }
 0x302   :  { %2143 = vrcp.f32 %v1331_v10 }
 0x30b   :  { %v2140_v23 = vpop.eup %2139 }
 0x30c   :  { %v1335_v18 = vmul.f32 %v2140_v23, %v2136_v19 }
 0x30d   :  { %v2142_v24 = vpop.eup %2141 }
 0x30e   :  { %v1334_v13 = vmul.f32 %v2142_v24, %v2786_v0  ;;  %v506_v0 = vadd.f32 %v2698_v20, %v2667_v6  ;;  %v549_v20 = vadd.f32 %v3021_v22, %v2672_v14  ;;  %v3024_v22 = vld [vmem:[#allocation17_spill] sm:$0xff] }
 0x30f   :  { %v2144_v8 = vpop.eup %2143 }
 0x310   :  { %v2832_v17 = vadd.f32 %v1335_v18, %v1334_v13  ;;  %v3022_v18 = vld [vmem:[#allocation14_spill] sm:$0xff] }
 0x311   :  { %v547_v24 = vadd.f32 %v3022_v18, %v2677_v21 }
 0x312   :  { %2145 = vtanh.f32 %v2832_v17 }
 0x31f   :  { %v2146_v5 = vpop.eup %2145 }
 0x320   :  { %v1338_v9 = vmul.f32 %v2146_v5, %v2144_v8 }
 0x322   :  { %v1343_v16 = vpack.c.bf16 %v1338_v9, %v1338_v9 }
 0x324   :  { %1377 = vmatmul.mubr.bf16.vlgmr.msra.gmra.mxu0 %v1343_v16  ;;  %1418 = vmatmul.mubr.bf16.vlgmr.msra.gmra.mxu1 %v1343_v16 }
 0x325   :  { %1460 = vmatpush1.bf16.msra.mxu0 %v2563_v35  ;;  %1501 = vmatpush1.bf16.msra.mxu1 %v2565_v36 }
 0x326   :  { %1461 = vmatprep.subr.bf16.mxu0 %v2571_v37  ;;  %1502 = vmatprep.subr.bf16.mxu1 %v2573_v38 }
 0x327   :  { %1491 = vmatprep.mubr.bf16.mxu0 %v3007_v31  ;;  %1532 = vmatprep.mubr.bf16.mxu1 %v3007_v31 }
 0x329   :  { %1462 = vmatpush1.bf16.msra.mxu0 %v2576_v39  ;;  %1503 = vmatpush1.bf16.msra.mxu1 %v2578_v40 }
 0x32a   :  { %1463 = vmatprep.subr.bf16.mxu0 %v2584_v41  ;;  %1504 = vmatprep.subr.bf16.mxu1 %v2586_v42 }
 0x32d   :  { %1464 = vmatpush1.bf16.msra.mxu0 %v2588_v43  ;;  %1505 = vmatpush1.bf16.msra.mxu1 %v2590_v44 }
 0x32e   :  { %1465 = vmatprep.subr.bf16.mxu0 %v2596_v45  ;;  %1506 = vmatprep.subr.bf16.mxu1 %v2598_v46 }
 0x331   :  { %1466 = vmatpush1.bf16.msra.mxu0 %v2600_v47  ;;  %1507 = vmatpush1.bf16.msra.mxu1 %v2602_v48 }
 0x332   :  { %1467 = vmatprep.subr.bf16.mxu0 %v2608_v49  ;;  %1508 = vmatprep.subr.bf16.mxu1 %v2610_v50 }
 0x335   :  { %1468 = vmatpush1.bf16.msra.mxu0 %v2612_v51  ;;  %1509 = vmatpush1.bf16.msra.mxu1 %v2614_v52 }
 0x336   :  { %1469 = vmatprep.subr.bf16.mxu0 %v2616_v53  ;;  %1510 = vmatprep.subr.bf16.mxu1 %v2618_v54 }
 0x339   :  { %1470 = vmatpush1.bf16.msra.mxu0 %v2624_v55  ;;  %1511 = vmatpush1.bf16.msra.mxu1 %v2626_v56 }
 0x33a   :  { %1471 = vmatprep.subr.bf16.mxu0 %v2630_v57  ;;  %1512 = vmatprep.subr.bf16.mxu1 %v2632_v58 }
 0x33d   :  { %1472 = vmatpush1.bf16.msra.mxu0 %v2636_v59  ;;  %1513 = vmatpush1.bf16.msra.mxu1 %v2638_v60 }
 0x33e   :  { %1473 = vmatprep.subr.bf16.mxu0 %v2642_v61  ;;  %1514 = vmatprep.subr.bf16.mxu1 %v2644_v62 }
 0x341   :  { %1474 = vmatpush1.bf16.msra.mxu0 %v2648_v63  ;;  %1515 = vmatpush1.bf16.msra.mxu1 %v2650_v1 }
 0x342   :  { %1574 = vmatprep.subr.bf16.mxu0 %v2557_v33  ;;  %1615 = vmatprep.subr.bf16.mxu1 %v2559_v34 }
 0x3e4   :  { %v1378_v26 = vpop.f32.mrf.mxu0  ;;  %v1419_v15 = vpop.f32.mrf.mxu1 }
 0x3e5   :  { %v1426_v4 = vadd.f32 %v1378_v26, %v506_v0  ;;  %v1428_v10 = vadd.f32 %v1419_v15, %v547_v24 }
 0x3e6   :  { %v1380_v11 = vpop.f32.mrf.mxu0  ;;  %v1421_v28 = vpop.f32.mrf.mxu1 }
 0x3e7   :  { %v2015_v7 = vmul.f32 -1.442695, %v1426_v4  ;;  %v1427_v2 = vadd.f32 %v1380_v11, %v508_v27  ;;  %v1429_v23 = vadd.f32 %v1421_v28, %v549_v20  ;;  %v601_v20 = vadd.f32 %v3024_v22, %v2775_v32 }
 0x3e8   :  { %v1382_v25 = vpop.f32.mrf.mxu0  ;;  %v1423_v29 = vpop.f32.mrf.mxu1 }
 0x3e9   :  { %2147 = vpow2.f32 %v2015_v7  ;;  %v2016_v12 = vmul.f32 -1.442695, %v1427_v2  ;;  %v2017_v13 = vmul.f32 -1.442695, %v1429_v23 }
 0x3ea   :  { %v1383_v3 = vpop.f32.mrf.mxu0  ;;  %v1424_v19 = vpop.f32.mrf.mxu1 }
 0x3eb   :  { %2149 = vpow2.f32 %v2016_v12 }
 0x3ec   :  { %2151 = vtanh.f32 %v1428_v10 }
 0x3ed   :  { %2153 = vpow2.f32 %v2017_v13 }
 0x3f6   :  { %v2148_v8 = vpop.eup %2147 }
 0x3f7   :  { %v1433_v5 = vadd.f32 1.0, %v2148_v8 }
 0x3f8   :  { %v2150_v9 = vpop.eup %2149 }
 0x3f9   :  { %2155 = vrcp.f32 %v1433_v5  ;;  %v1439_v16 = vadd.f32 1.0, %v2150_v9  ;;  %v2152_v0 = vpop.eup %2151 }
 0x3fa   :  { %v2154_v26 = vpop.eup %2153 }
 0x3fb   :  { %2157 = vrcp.f32 %v1439_v16  ;;  %v1446_v11 = vadd.f32 1.0, %v2154_v26 }
 0x3fd   :  { %2159 = vrcp.f32 %v1446_v11 }
 0x406   :  { %v2156_v30 = vpop.eup %2155 }
 0x407   :  { %v1450_v27 = vmul.f32 %v2156_v30, %v2152_v0  ;;  %v3026_v30 = vld [vmem:[#allocation18_spill] sm:$0xff] }
 0x408   :  { %v2158_v4 = vpop.eup %2157 }
 0x409   :  { %v1449_v28 = vmul.f32 %v2158_v4, %v2832_v17  ;;  %v3023_v17 = vld [vmem:[#allocation16_spill] sm:$0xff] }
 0x40a   :  { %v2160_v15 = vpop.eup %2159  ;;  %v599_v12 = vadd.f32 %v3023_v17, %v2667_v6 }
 0x40b   :  { %v2878_v7 = vadd.f32 %v1450_v27, %v1449_v28  ;;  %v640_v27 = vadd.f32 %v3026_v30, %v2677_v21 }
 0x40d   :  { %2161 = vtanh.f32 %v2878_v7 }
 0x41a   :  { %v2162_v2 = vpop.eup %2161 }
 0x41b   :  { %v1453_v25 = vmul.f32 %v2162_v2, %v2160_v15 }
 0x41d   :  { %v1458_v29 = vpack.c.bf16 %v1453_v25, %v1453_v25 }
 0x41f   :  { %1492 = vmatmul.mubr.bf16.vlgmr.msra.gmra.mxu0 %v1458_v29  ;;  %1533 = vmatmul.mubr.bf16.vlgmr.msra.gmra.mxu1 %v1458_v29 }
 0x420   :  { %1575 = vmatpush1.bf16.msra.mxu0 %v2563_v35  ;;  %1616 = vmatpush1.bf16.msra.mxu1 %v2565_v36 }
 0x421   :  { %1576 = vmatprep.subr.bf16.mxu0 %v2571_v37  ;;  %1617 = vmatprep.subr.bf16.mxu1 %v2573_v38 }
 0x422   :  { %1606 = vmatprep.mubr.bf16.mxu0 %v3007_v31  ;;  %1647 = vmatprep.mubr.bf16.mxu1 %v3007_v31 }
 0x424   :  { %1577 = vmatpush1.bf16.msra.mxu0 %v2576_v39  ;;  %1618 = vmatpush1.bf16.msra.mxu1 %v2578_v40 }
 0x425   :  { %1578 = vmatprep.subr.bf16.mxu0 %v2584_v41  ;;  %1619 = vmatprep.subr.bf16.mxu1 %v2586_v42 }
 0x428   :  { %1579 = vmatpush1.bf16.msra.mxu0 %v2588_v43  ;;  %1620 = vmatpush1.bf16.msra.mxu1 %v2590_v44 }
 0x429   :  { %1580 = vmatprep.subr.bf16.mxu0 %v2596_v45  ;;  %1621 = vmatprep.subr.bf16.mxu1 %v2598_v46 }
 0x42c   :  { %1581 = vmatpush1.bf16.msra.mxu0 %v2600_v47  ;;  %1622 = vmatpush1.bf16.msra.mxu1 %v2602_v48 }
 0x42d   :  { %1582 = vmatprep.subr.bf16.mxu0 %v2608_v49  ;;  %1623 = vmatprep.subr.bf16.mxu1 %v2610_v50 }
 0x430   :  { %1583 = vmatpush1.bf16.msra.mxu0 %v2612_v51  ;;  %1624 = vmatpush1.bf16.msra.mxu1 %v2614_v52 }
 0x431   :  { %1584 = vmatprep.subr.bf16.mxu0 %v2616_v53  ;;  %1625 = vmatprep.subr.bf16.mxu1 %v2618_v54 }
 0x434   :  { %1585 = vmatpush1.bf16.msra.mxu0 %v2624_v55  ;;  %1626 = vmatpush1.bf16.msra.mxu1 %v2626_v56 }
 0x435   :  { %1586 = vmatprep.subr.bf16.mxu0 %v2630_v57  ;;  %1627 = vmatprep.subr.bf16.mxu1 %v2632_v58 }
 0x438   :  { %1587 = vmatpush1.bf16.msra.mxu0 %v2636_v59  ;;  %1628 = vmatpush1.bf16.msra.mxu1 %v2638_v60 }
 0x439   :  { %1588 = vmatprep.subr.bf16.mxu0 %v2642_v61  ;;  %1629 = vmatprep.subr.bf16.mxu1 %v2644_v62 }
 0x43c   :  { %1589 = vmatpush1.bf16.msra.mxu0 %v2648_v63  ;;  %1630 = vmatpush1.bf16.msra.mxu1 %v2650_v1 }
 0x43d   :  { %1689 = vmatprep.subr.bf16.mxu0 %v2557_v33  ;;  %1730 = vmatprep.subr.bf16.mxu1 %v2559_v34  ;;  %v3025_v34 = vld [vmem:[#allocation19_spill] sm:$0xff] }
 0x43e   :  { %v642_v0 = vadd.f32 %v3025_v34, %v2672_v14 }
 0x4df   :  { %v1493_v3 = vpop.f32.mrf.mxu0  ;;  %v1534_v19 = vpop.f32.mrf.mxu1 }
 0x4e0   :  { %v1541_v23 = vadd.f32 %v1493_v3, %v599_v12  ;;  %v1543_v4 = vadd.f32 %v1534_v19, %v640_v27 }
 0x4e1   :  { %v1495_v18 = vpop.f32.mrf.mxu0  ;;  %v1536_v24 = vpop.f32.mrf.mxu1 }
 0x4e2   :  { %v2018_v10 = vmul.f32 -1.442695, %v1541_v23  ;;  %v1542_v13 = vadd.f32 %v1495_v18, %v601_v20  ;;  %v1544_v26 = vadd.f32 %v1536_v24, %v642_v0 }
 0x4e3   :  { %v1497_v8 = vpop.f32.mrf.mxu0  ;;  %v1538_v5 = vpop.f32.mrf.mxu1 }
 0x4e4   :  { %2163 = vpow2.f32 %v2018_v10  ;;  %v2019_v9 = vmul.f32 -1.442695, %v1542_v13  ;;  %v2020_v11 = vmul.f32 -1.442695, %v1544_v26 }
 0x4e5   :  { %v1498_v33 = vpop.f32.mrf.mxu0  ;;  %v1539_v16 = vpop.f32.mrf.mxu1 }
 0x4e6   :  { %2165 = vpow2.f32 %v2019_v9 }
 0x4e7   :  { %2167 = vtanh.f32 %v1543_v4  ;;  %v2229_v4 = vld [vmem:[#allocation8 + $0xe0] ss:$16 sps:$4 sm:$0xff]  }
 0x4e8   :  { %2169 = vpow2.f32 %v2020_v11  ;;  %v2230_v11 = vld [vmem:[#allocation8 + $0xe8] ss:$16 sps:$4 sm:$0xff]  }
 0x4f1   :  { %v2164_v28 = vpop.eup %2163 }
 0x4f2   :  { %v1548_v15 = vadd.f32 1.0, %v2164_v28  ;;  %v2231_v28 = vld [vmem:[#allocation8 + $0xc4] ss:$16 sps:$4 sm:$0xff]  }
 0x4f3   :  { %v2166_v2 = vpop.eup %2165 }
 0x4f4   :  { %2171 = vrcp.f32 %v1548_v15  ;;  %v1554_v25 = vadd.f32 1.0, %v2166_v2  ;;  %v2168_v29 = vpop.eup %2167  ;;  %v2232_v15 = vld [vmem:[#allocation8 + $0xcc] ss:$16 sps:$4 sm:$0xff]   ;;  %v2233_v2 = vld [vmem:[#allocation8 + $0xc0] ss:$16 sps:$4 sm:$0xff]  }
 0x4f5   :  { %v2170_v17 = vpop.eup %2169 }
 0x4f6   :  { %2173 = vrcp.f32 %v1554_v25  ;;  %v1561_v20 = vadd.f32 1.0, %v2170_v17  ;;  %v2234_v25 = vld [vmem:[#allocation8 + $0xc8] ss:$16 sps:$4 sm:$0xff]   ;;  %v2236_v17 = vld [vmem:[#allocation8 + $0xac] ss:$16 sps:$4 sm:$0xff]  }
 0x4f8   :  { %2175 = vrcp.f32 %v1561_v20  ;;  %v2240_v20 = vld [vmem:[#allocation8 + $0x8c] ss:$16 sps:$4 sm:$0xff]  }
 0x501   :  { %v2172_v12 = vpop.eup %2171 }
 0x502   :  { %v1565_v3 = vmul.f32 %v2172_v12, %v2168_v29  ;;  %v2235_v29 = vld [vmem:[#allocation8 + $0xa4] ss:$16 sps:$4 sm:$0xff]   ;;  %v2237_v12 = vld [vmem:[#allocation8 + $0xa0] ss:$16 sps:$4 sm:$0xff]  }
 0x503   :  { %v2174_v22 = vpop.eup %2173 }
 0x504   :  { %v1564_v23 = vmul.f32 %v2174_v22, %v2878_v7  ;;  %v2239_v22 = vld [vmem:[#allocation8 + $0x84] ss:$16 sps:$4 sm:$0xff]  }
 0x505   :  { %v2176_v19 = vpop.eup %2175 }
 0x506   :  { %v2924_v18 = vadd.f32 %v1565_v3, %v1564_v23  ;;  %v2238_v3 = vld [vmem:[#allocation8 + $0xa8] ss:$16 sps:$4 sm:$0xff]   ;;  %v2241_v23 = vld [vmem:[#allocation8 + $0x80] ss:$16 sps:$4 sm:$0xff]  }
 0x508   :  { %2177 = vtanh.f32 %v2924_v18 }
 0x515   :  { %v2178_v24 = vpop.eup %2177 }
 0x516   :  { %v1568_v10 = vmul.f32 %v2178_v24, %v2176_v19  ;;  %v2244_v19 = vld [vmem:[#allocation8 + $0x6c] ss:$16 sps:$4 sm:$0xff]   ;;  %v2245_v24 = vld [vmem:[#allocation8 + $0x60] ss:$16 sps:$4 sm:$0xff]  }
 0x518   :  { %v1573_v13 = vpack.c.bf16 %v1568_v10, %v1568_v10  ;;  %v2246_v10 = vld [vmem:[#allocation8 + $0x68] ss:$16 sps:$4 sm:$0xff]  }
 0x51a   :  { %1607 = vmatmul.mubr.bf16.vlgmr.msra.gmra.mxu0 %v1573_v13  ;;  %1648 = vmatmul.mubr.bf16.vlgmr.msra.gmra.mxu1 %v1573_v13  ;;  %v2247_v13 = vld [vmem:[#allocation8 + $0x44] ss:$16 sps:$4 sm:$0xff]  }
 0x51b   :  { %1690 = vmatpush1.bf16.msra.mxu0 %v2563_v35  ;;  %1731 = vmatpush1.bf16.msra.mxu1 %v2565_v36  ;;  %v2227_v35 = vld [vmem:[#allocation8 + $0xe4] ss:$16 sps:$4 sm:$0xff]   ;;  %v2228_v36 = vld [vmem:[#allocation8 + $0xec] ss:$16 sps:$4 sm:$0xff]  }
 0x51c   :  { %1691 = vmatprep.subr.bf16.mxu0 %v2571_v37  ;;  %1732 = vmatprep.subr.bf16.mxu1 %v2573_v38  ;;  %v3027_v37 = vld [vmem:[#allocation20_spill] sm:$0xff] }
 0x51d   :  { %1721 = vmatprep.mubr.bf16.mxu0 %v3007_v31  ;;  %1762 = vmatprep.mubr.bf16.mxu1 %v3007_v31  ;;  %v692_v38 = vadd.f32 %v3027_v37, %v2667_v6  ;;  %v2250_v37 = vld [vmem:[#allocation8 + $0x48] ss:$16 sps:$4 sm:$0xff]  }
 0x51f   :  { %1692 = vmatpush1.bf16.msra.mxu0 %v2576_v39  ;;  %1733 = vmatpush1.bf16.msra.mxu1 %v2578_v40 }
 0x520   :  { %1693 = vmatprep.subr.bf16.mxu0 %v2584_v41  ;;  %1734 = vmatprep.subr.bf16.mxu1 %v2586_v42  ;;  %v3028_v41 = vld [vmem:[#allocation21_spill] sm:$0xff] }
 0x521   :  { %v694_v42 = vadd.f32 %v3028_v41, %v2775_v32  ;;  %v2254_v41 = vld [vmem:[#allocation8 + $0x28] ss:$16 sps:$4 sm:$0xff]  }
 0x523   :  { %1694 = vmatpush1.bf16.msra.mxu0 %v2588_v43  ;;  %1735 = vmatpush1.bf16.msra.mxu1 %v2590_v44 }
 0x524   :  { %1695 = vmatprep.subr.bf16.mxu0 %v2596_v45  ;;  %1736 = vmatprep.subr.bf16.mxu1 %v2598_v46 }
 0x527   :  { %1696 = vmatpush1.bf16.msra.mxu0 %v2600_v47  ;;  %1737 = vmatpush1.bf16.msra.mxu1 %v2602_v48 }
 0x528   :  { %1697 = vmatprep.subr.bf16.mxu0 %v2608_v49  ;;  %1738 = vmatprep.subr.bf16.mxu1 %v2610_v50 }
 0x52b   :  { %1698 = vmatpush1.bf16.msra.mxu0 %v2612_v51  ;;  %1739 = vmatpush1.bf16.msra.mxu1 %v2614_v52 }
 0x52c   :  { %1699 = vmatprep.subr.bf16.mxu0 %v2616_v53  ;;  %1740 = vmatprep.subr.bf16.mxu1 %v2618_v54  ;;  %v3029_v53 = vld [vmem:[#allocation23_spill] sm:$0xff] }
 0x52d   :  { %v735_v54 = vadd.f32 %v3029_v53, %v2672_v14 }
 0x52f   :  { %1700 = vmatpush1.bf16.msra.mxu0 %v2624_v55  ;;  %1741 = vmatpush1.bf16.msra.mxu1 %v2626_v56  ;;  %v3030_v56 = vld [vmem:[#allocation22_spill] sm:$0xff] }
 0x530   :  { %1701 = vmatprep.subr.bf16.mxu0 %v2630_v57  ;;  %1742 = vmatprep.subr.bf16.mxu1 %v2632_v58  ;;  %v733_v57 = vadd.f32 %v3030_v56, %v2677_v21 }
 0x533   :  { %1702 = vmatpush1.bf16.msra.mxu0 %v2636_v59  ;;  %1743 = vmatpush1.bf16.msra.mxu1 %v2638_v60 }
 0x534   :  { %1703 = vmatprep.subr.bf16.mxu0 %v2642_v61  ;;  %1744 = vmatprep.subr.bf16.mxu1 %v2644_v62 }
 0x537   :  { %1704 = vmatpush1.bf16.msra.mxu0 %v2648_v63  ;;  %1745 = vmatpush1.bf16.msra.mxu1 %v2650_v1 }
 0x538   :  { %1804 = vmatprep.subr.bf16.mxu0 %v2227_v35  ;;  %1845 = vmatprep.subr.bf16.mxu1 %v2228_v36  ;;  %v2248_v35 = vld [vmem:[#allocation8 + $0x4c] ss:$16 sps:$4 sm:$0xff]   ;;  %v2249_v36 = vld [vmem:[#allocation8 + $0x40] ss:$16 sps:$4 sm:$0xff]  }
 0x5da   :  { %v1608_v39 = vpop.f32.mrf.mxu0  ;;  %v1649_v40 = vpop.f32.mrf.mxu1 }
 0x5db   :  { %v1656_v43 = vadd.f32 %v1608_v39, %v692_v38  ;;  %v1658_v58 = vadd.f32 %v1649_v40, %v733_v57  ;;  %v2251_v38 = vld [vmem:[#allocation8 + $0x24] ss:$16 sps:$4 sm:$0xff]   ;;  %v2252_v39 = vld [vmem:[#allocation8 + $0x2c] ss:$16 sps:$4 sm:$0xff]   ;;  %v2253_v40 = vld [vmem:[#allocation8 + $0x20] ss:$16 sps:$4 sm:$0xff]  }
 0x5dc   :  { %v1610_v44 = vpop.f32.mrf.mxu0  ;;  %v1651_v45 = vpop.f32.mrf.mxu1 }
 0x5dd   :  { %v2021_v46 = vmul.f32 -1.442695, %v1656_v43  ;;  %v1657_v47 = vadd.f32 %v1610_v44, %v694_v42  ;;  %v1659_v55 = vadd.f32 %v1651_v45, %v735_v54  ;;  %v2255_v42 = vld [vmem:[#allocation8 + $0x4] ss:$16 sps:$4 sm:$0xff]   ;;  %v2256_v43 = vld [vmem:[#allocation8 + $0xc] ss:$16 sps:$4 sm:$0xff]  }
 0x5de   :  { %v1612_v48 = vpop.f32.mrf.mxu0  ;;  %v1653_v49 = vpop.f32.mrf.mxu1  ;;  %v2257_v44 = vld [vmem:[#allocation8] ss:$16 sps:$4 sm:$0xff]   ;;  %v2258_v45 = vld [vmem:[#allocation8 + $0x8] ss:$16 sps:$4 sm:$0xff]  }
 0x5df   :  { %2179 = vpow2.f32 %v2021_v46  ;;  %v2022_v50 = vmul.f32 -1.442695, %v1657_v47  ;;  %v2023_v59 = vmul.f32 -1.442695, %v1659_v55  ;;  %v3031_v46 = vld [vmem:[#allocation24_spill] sm:$0xff] }
 0x5e0   :  { %v1613_v51 = vpop.f32.mrf.mxu0  ;;  %v1654_v52 = vpop.f32.mrf.mxu1  ;;  %v785_v47 = vadd.f32 %v3031_v46, %v2667_v6 }
 0x5e1   :  { %2181 = vpow2.f32 %v2022_v50  ;;  %v3032_v50 = vld [vmem:[#allocation25_spill] sm:$0xff] }
 0x5e2   :  { %2183 = vtanh.f32 %v1658_v58  ;;  %v787_v51 = vadd.f32 %v3032_v50, %v2775_v32 }
 0x5e3   :  { %2185 = vpow2.f32 %v2023_v59 }
 0x5ec   :  { %v2180_v60 = vpop.eup %2179 }
 0x5ed   :  { %v1663_v61 = vadd.f32 1.0, %v2180_v60 }
 0x5ee   :  { %v2182_v62 = vpop.eup %2181 }
 0x5ef   :  { %2187 = vrcp.f32 %v1663_v61  ;;  %v1669_v63 = vadd.f32 1.0, %v2182_v62  ;;  %v2184_v1 = vpop.eup %2183  ;;  %v3033_v62 = vld [vmem:[#allocation27_spill] sm:$0xff] }
 0x5f0   :  { %v2186_v7 = vpop.eup %2185 }
 0x5f1   :  { %2189 = vrcp.f32 %v1669_v63  ;;  %v1676_v33 = vadd.f32 1.0, %v2186_v7  ;;  %v828_v63 = vadd.f32 %v3033_v62, %v2672_v14  ;;  %v3034_v7 = vld [vmem:[#allocation26_spill] sm:$0xff] }
 0x5f3   :  { %2191 = vrcp.f32 %v1676_v33 }
 0x5fc   :  { %v2188_v8 = vpop.eup %2187 }
 0x5fd   :  { %v1680_v5 = vmul.f32 %v2188_v8, %v2184_v1  ;;  %v826_v8 = vadd.f32 %v3034_v7, %v2677_v21 }
 0x5fe   :  { %v2190_v9 = vpop.eup %2189 }
 0x5ff   :  { %v1679_v16 = vmul.f32 %v2190_v9, %v2924_v18  ;;  %v2242_v18 = vld [vmem:[#allocation8 + $0x88] ss:$16 sps:$4 sm:$0xff]  }
 0x600   :  { %v2192_v0 = vpop.eup %2191 }
 0x601   :  { %v2968_v34 = vadd.f32 %v1680_v5, %v1679_v16 }
 0x603   :  { %2193 = vtanh.f32 %v2968_v34 }
 0x610   :  { %v2194_v26 = vpop.eup %2193 }
 0x611   :  { %v1683_v30 = vmul.f32 %v2194_v26, %v2192_v0 }
 0x613   :  { %v1688_v27 = vpack.c.bf16 %v1683_v30, %v1683_v30 }
 0x615   :  { %1722 = vmatmul.mubr.bf16.vlgmr.msra.gmra.mxu0 %v1688_v27  ;;  %1763 = vmatmul.mubr.bf16.vlgmr.msra.gmra.mxu1 %v1688_v27 }
 0x616   :  { %1805 = vmatpush1.bf16.msra.mxu0 %v2229_v4  ;;  %1846 = vmatpush1.bf16.msra.mxu1 %v2230_v11 }
 0x617   :  { %1806 = vmatprep.subr.bf16.mxu0 %v2231_v28  ;;  %1847 = vmatprep.subr.bf16.mxu1 %v2232_v15 }
 0x618   :  { %1836 = vmatprep.mubr.bf16.mxu0 %v3007_v31  ;;  %1877 = vmatprep.mubr.bf16.mxu1 %v3007_v31  ;;  %v2243_v31 = vld [vmem:[#allocation8 + $0x64] ss:$16 sps:$4 sm:$0xff]  }
 0x61a   :  { %1807 = vmatpush1.bf16.msra.mxu0 %v2233_v2  ;;  %1848 = vmatpush1.bf16.msra.mxu1 %v2234_v25 }
 0x61b   :  { %1808 = vmatprep.subr.bf16.mxu0 %v2235_v29  ;;  %1849 = vmatprep.subr.bf16.mxu1 %v2236_v17 }
 0x61e   :  { %1809 = vmatpush1.bf16.msra.mxu0 %v2237_v12  ;;  %1850 = vmatpush1.bf16.msra.mxu1 %v2238_v3 }
 0x61f   :  { %1810 = vmatprep.subr.bf16.mxu0 %v2239_v22  ;;  %1851 = vmatprep.subr.bf16.mxu1 %v2240_v20  ;;  %v3035_v22 = vld [vmem:[#allocation28_spill] sm:$0xff] }
 0x620   :  { %v878_v20 = vadd.f32 %v3035_v22, %v2667_v6 }
 0x622   :  { %1811 = vmatpush1.bf16.msra.mxu0 %v2241_v23  ;;  %1852 = vmatpush1.bf16.msra.mxu1 %v2242_v18 }
 0x623   :  { %1812 = vmatprep.subr.bf16.mxu0 %v2243_v31  ;;  %1853 = vmatprep.subr.bf16.mxu1 %v2244_v19  ;;  %v3036_v31 = vld [vmem:[#allocation29_spill] sm:$0xff] }
 0x624   :  { %v880_v19 = vadd.f32 %v3036_v31, %v2775_v32 }
 0x626   :  { %1813 = vmatpush1.bf16.msra.mxu0 %v2245_v24  ;;  %1854 = vmatpush1.bf16.msra.mxu1 %v2246_v10 }
 0x627   :  { %1814 = vmatprep.subr.bf16.mxu0 %v2247_v13  ;;  %1855 = vmatprep.subr.bf16.mxu1 %v2248_v35 }
 0x62a   :  { %1815 = vmatpush1.bf16.msra.mxu0 %v2249_v36  ;;  %1856 = vmatpush1.bf16.msra.mxu1 %v2250_v37 }
 0x62b   :  { %1816 = vmatprep.subr.bf16.mxu0 %v2251_v38  ;;  %1857 = vmatprep.subr.bf16.mxu1 %v2252_v39 }
 0x62e   :  { %1817 = vmatpush1.bf16.msra.mxu0 %v2253_v40  ;;  %1858 = vmatpush1.bf16.msra.mxu1 %v2254_v41  ;;  %v3037_v41 = vld [vmem:[#allocation31_spill] sm:$0xff] }
 0x62f   :  { %1818 = vmatprep.subr.bf16.mxu0 %v2255_v42  ;;  %1859 = vmatprep.subr.bf16.mxu1 %v2256_v43  ;;  %v921_v6 = vadd.f32 %v3037_v41, %v2672_v14  ;;  %v3038_v43 = vld [vmem:[#allocation30_spill] sm:$0xff] }
 0x632   :  { %1819 = vmatpush1.bf16.msra.mxu0 %v2257_v44  ;;  %1860 = vmatpush1.bf16.msra.mxu1 %v2258_v45  ;;  %v919_v44 = vadd.f32 %v3038_v43, %v2677_v21 }
 0x6d5   :  { %v1723_v48 = vpop.f32.mrf.mxu0  ;;  %v1764_v49 = vpop.f32.mrf.mxu1 }
 0x6d6   :  { %v1771_v52 = vadd.f32 %v1723_v48, %v785_v47  ;;  %v1773_v5 = vadd.f32 %v1764_v49, %v826_v8 }
 0x6d7   :  { %v1725_v53 = vpop.f32.mrf.mxu0  ;;  %v1766_v54 = vpop.f32.mrf.mxu1 }
 0x6d8   :  { %v2024_v55 = vmul.f32 -1.442695, %v1771_v52  ;;  %v1772_v56 = vadd.f32 %v1725_v53, %v787_v51  ;;  %v1774_v1 = vadd.f32 %v1766_v54, %v828_v63 }
 0x6d9   :  { %v1727_v57 = vpop.f32.mrf.mxu0  ;;  %v1768_v58 = vpop.f32.mrf.mxu1 }
 0x6da   :  { %2195 = vpow2.f32 %v2024_v55  ;;  %v2025_v59 = vmul.f32 -1.442695, %v1772_v56  ;;  %v2026_v9 = vmul.f32 -1.442695, %v1774_v1 }
 0x6db   :  { %v1728_v60 = vpop.f32.mrf.mxu0  ;;  %v1769_v61 = vpop.f32.mrf.mxu1 }
 0x6dc   :  { %2197 = vpow2.f32 %v2025_v59 }
 0x6dd   :  { %2199 = vtanh.f32 %v1773_v5 }
 0x6de   :  { %2201 = vpow2.f32 %v2026_v9 }
 0x6e7   :  { %v2196_v33 = vpop.eup %2195 }
 0x6e8   :  { %v1778_v16 = vadd.f32 1.0, %v2196_v33 }
 0x6e9   :  { %v2198_v0 = vpop.eup %2197 }
 0x6ea   :  { %2203 = vrcp.f32 %v1778_v16  ;;  %v1784_v26 = vadd.f32 1.0, %v2198_v0  ;;  %v2200_v30 = vpop.eup %2199 }
 0x6eb   :  { %v2202_v27 = vpop.eup %2201 }
 0x6ec   :  { %2205 = vrcp.f32 %v1784_v26  ;;  %v1791_v15 = vadd.f32 1.0, %v2202_v27 }
 0x6ee   :  { %2207 = vrcp.f32 %v1791_v15 }
 0x6f7   :  { %v2204_v4 = vpop.eup %2203 }
 0x6f8   :  { %v1795_v11 = vmul.f32 %v2204_v4, %v2200_v30 }
 0x6f9   :  { %v2206_v28 = vpop.eup %2205 }
 0x6fa   :  { %v1794_v2 = vmul.f32 %v2206_v28, %v2968_v34 }
 0x6fb   :  { %v2208_v29 = vpop.eup %2207 }
 0x6fc   :  { %v1796_v25 = vadd.f32 %v1795_v11, %v1794_v2 }
 0x6fe   :  { %2209 = vtanh.f32 %v1796_v25 }
 0x70b   :  { %v2210_v17 = vpop.eup %2209 }
 0x70c   :  { %v1798_v12 = vmul.f32 %v2210_v17, %v2208_v29 }
 0x70e   :  { %v1803_v3 = vpack.c.bf16 %v1798_v12, %v1798_v12 }
 0x710   :  { %1837 = vmatmul.mubr.bf16.vlgmr.msra.gmra.mxu0 %v1803_v3  ;;  %1878 = vmatmul.mubr.bf16.vlgmr.msra.gmra.mxu1 %v1803_v3 }
 0x7d0   :  { %v1838_v23 = vpop.f32.mrf.mxu0  ;;  %v1879_v18 = vpop.f32.mrf.mxu1 }
 0x7d1   :  { %v1886_v24 = vadd.f32 %v1838_v23, %v878_v20  ;;  %v1888_v32 = vadd.f32 %v1879_v18, %v919_v44 }
 0x7d2   :  { %v1840_v10 = vpop.f32.mrf.mxu0  ;;  %v1881_v34 = vpop.f32.mrf.mxu1 }
 0x7d3   :  { %v2027_v13 = vmul.f32 -1.442695, %v1886_v24  ;;  %v1887_v35 = vadd.f32 %v1840_v10, %v880_v19  ;;  %v1889_v42 = vadd.f32 %v1881_v34, %v921_v6 }
 0x7d4   :  { %v1842_v36 = vpop.f32.mrf.mxu0  ;;  %v1883_v37 = vpop.f32.mrf.mxu1 }
 0x7d5   :  { %2211 = vpow2.f32 %v2027_v13  ;;  %v2028_v38 = vmul.f32 -1.442695, %v1887_v35  ;;  %v2029_v45 = vmul.f32 -1.442695, %v1889_v42 }
 0x7d6   :  { %v1843_v39 = vpop.f32.mrf.mxu0  ;;  %v1884_v40 = vpop.f32.mrf.mxu1 }
 0x7d7   :  { %2213 = vpow2.f32 %v2028_v38 }
 0x7d8   :  { %2215 = vtanh.f32 %v1888_v32 }
 0x7d9   :  { %2217 = vpow2.f32 %v2029_v45 }
 0x7e2   :  { %v2212_v46 = vpop.eup %2211 }
 0x7e3   :  { %v1893_v47 = vadd.f32 1.0, %v2212_v46 }
 0x7e4   :  { %v2214_v48 = vpop.eup %2213 }
 0x7e5   :  { %2219 = vrcp.f32 %v1893_v47  ;;  %v1899_v49 = vadd.f32 1.0, %v2214_v48  ;;  %v2216_v50 = vpop.eup %2215 }
 0x7e6   :  { %v2218_v51 = vpop.eup %2217 }
 0x7e7   :  { %2221 = vrcp.f32 %v1899_v49  ;;  %v1906_v14 = vadd.f32 1.0, %v2218_v51 }
 0x7e9   :  { %2223 = vrcp.f32 %v1906_v14 }
 0x7f2   :  { %v2220_v52 = vpop.eup %2219 }
 0x7f3   :  { %v1910_v53 = vmul.f32 %v2220_v52, %v2216_v50 }
 0x7f4   :  { %v2222_v54 = vpop.eup %2221 }
 0x7f5   :  { %v1909_v55 = vmul.f32 %v2222_v54, %v1796_v25 }
 0x7f6   :  { %v2224_v21 = vpop.eup %2223 }
 0x7f7   :  { %v1911_v56 = vadd.f32 %v1910_v53, %v1909_v55 }
 0x7f9   :  { %2225 = vtanh.f32 %v1911_v56 }
 0x806   :  { %v2226_v57 = vpop.eup %2225 }
 0x807   :  { %v1913_v58 = vmul.f32 %v2226_v57, %v2224_v21 }
 0x809   :  { %1914 = vst [vmem:[#allocation9] sm:$0xff] %v1913_v58 }
 0x80a   :  { %2330 = shalt.err (!%p2327_p5)
}
 0x80b   :  { %1924 = dma.vmem_to_hbm [thread:$0]  %s1922_s7, 128, %s2997_s4, [#allocation5]  }
 0x80c   :  { %2343 = dma.done.wait [#allocation5], 128  }
 0x80d   :  { %2344 = vsyncadd [#allocation5], 4294967168 }
 0x80e   :  { %1928 = vsyncpa [#allocation4], 1 }
 0x80f   :  { %1929 = vsyncpa [#allocation7], 1 }
 0x810   :  { %1930 = vsyncpa [#allocation5], 1 }

</bundles_post_ra>
